<compile_context>
chip_gen: v6e
topology: v6e:2x2x1
jax: 0.10.0
libtpu: 0.0.40
codegen_flags: <defaults>
</compile_context>

<pallas_src>
import math
import functools

import jax
import jax.numpy as jnp
from jax import lax
from jax.experimental import pallas as pl
from jax.experimental.pallas import tpu as pltpu

EPS = 1e-6  # both LayerNorms use eps=1e-6


def _layernorm(v, gamma, beta):
    mu = jnp.mean(v, axis=-1, keepdims=True)
    var = jnp.mean((v - mu) ** 2, axis=-1, keepdims=True)
    return (v - mu) * lax.rsqrt(var + EPS) * gamma + beta


def _gelu_tanh(h):
    c = math.sqrt(2.0 / math.pi)
    return 0.5 * h * (1.0 + jnp.tanh(c * (h + 0.044715 * h * h * h)))


# --------------------------------------------------------------------------
# Stage 1: pre-LN + fused QKV projection (runs once over the sequence)
# --------------------------------------------------------------------------
def qkv_proj_kernel(x_ref, g1_ref, be1_ref, wqkv_ref, bqkv_ref,
                    q_ref, kT_ref, v_ref,
                    *, num_kv_heads, num_queries_per_group, head_dim,
                    compute_dtype):
    KV, Q, H = num_kv_heads, num_queries_per_group, head_dim
    NH = KV * Q
    t = x_ref.shape[0]

    xn = _layernorm(x_ref[...], g1_ref[...], be1_ref[...])          # (t, E) f32
    qkv_f32 = (jnp.dot(xn.astype(compute_dtype), wqkv_ref[...],
                       preferred_element_type=jnp.float32)
               + bqkv_ref[...])                                      # (t, (NH+2KV)*H)
    qkv = qkv_f32.astype(compute_dtype)

    # Q: row-stacked per head (head-major within this row tile) -> stage 2 can
    # batch a whole KV group's heads into a single (Q*tq, H) MXU operand.
    for h in range(NH):
        q_ref[h * t:(h + 1) * t, :] = qkv[:, h * H:(h + 1) * H]

    # K: pre-transposed once here so stage 2 never transposes in its hot loop.
    kT_ref[...] = jnp.transpose(
        qkv_f32[:, NH * H:(NH + KV) * H]).astype(compute_dtype)      # (KV*H, t)

    # V: per KV head on the leading axis -> clean (tkv, H) slices in stage 2.
    for b in range(KV):
        off = (NH + KV) * H + b * H
        v_ref[b] = qkv[:, off:off + H]


# --------------------------------------------------------------------------
# Stage 2: flash-style GQ attention + folded merge/projection + residual + MLP
# --------------------------------------------------------------------------
def gqa_attn_mlp_kernel(x_ref, q_ref, kT_ref, v_ref,
                        g2_ref, be2_ref, wattn_ref, battn_ref,
                        w1_ref, b1_ref, w2_ref, b2_ref,
                        out_ref, state_sc,
                        *, num_kv_heads, num_queries_per_group, head_dim,
                        compute_dtype):
    KV, Q, H = num_kv_heads, num_queries_per_group, head_dim
    NH = KV * Q
    tq = x_ref.shape[0]
    j = pl.program_id(1)
    nj = pl.num_programs(1)

    # combined online-softmax state: cols [0:H]=acc, [H]=running max, [H+1]=denom
    A0, A1 = 0, H
    M0, M1 = H, H + 1
    L0, L1 = H + 1, H + 2

    @pl.when(j == 0)
    def _init():
        state_sc[...] = jnp.zeros(state_sc.shape, jnp.float32)
        state_sc[:, M0:M1] = jnp.full((NH * tq, 1), -jnp.inf, jnp.float32)

    # ---- online softmax over this KV tile: ONE score + ONE PV matmul per group ----
    for b in range(KV):
        r0, r1 = b * Q * tq, (b + 1) * Q * tq
        q_g = q_ref[r0:r1, :]                       # (Q*tq, H) bf16, heads batched
        kT_b = kT_ref[b * H:(b + 1) * H, :]         # (H, tkv)  bf16
        v_b = v_ref[b]                              # (tkv, H)  bf16

        s = jnp.dot(q_g, kT_b, preferred_element_type=jnp.float32)  # (Q*tq, tkv)

        m_prev = state_sc[r0:r1, M0:M1]
        l_prev = state_sc[r0:r1, L0:L1]
        acc_prev = state_sc[r0:r1, A0:A1]

        m_new = jnp.maximum(m_prev, jnp.max(s, axis=-1, keepdims=True))
        alpha = jnp.exp(m_prev - m_new)
        p = jnp.exp(s - m_new)                                        # f32
        pv = jnp.dot(p.astype(compute_dtype), v_b,
                     preferred_element_type=jnp.float32)              # (Q*tq, H)

        state_sc[r0:r1, A0:A1] = alpha * acc_prev + pv
        state_sc[r0:r1, M0:M1] = m_new
        state_sc[r0:r1, L0:L1] = alpha * l_prev + jnp.sum(p, axis=-1, keepdims=True)

    # ---- finalize on the last KV tile ----
    @pl.when(j == nj - 1)
    def _finalize():
        x_q = x_ref[...]                                              # (tq, E) f32

        # Merge Linear + output projection were folded on the host into a single
        # (NH*H, E) weight; evaluate that one matmul block-by-head to match the
        # row-stacked accumulator (no in-kernel concatenations).
        attn = jnp.zeros_like(x_q)
        for h in range(NH):
            r0, r1 = h * tq, (h + 1) * tq
            inv_l = pl.reciprocal(state_sc[r0:r1, L0:L1], approx=True)
            head = (state_sc[r0:r1, A0:A1] * inv_l).astype(compute_dtype)
            attn = attn + jnp.dot(head, wattn_ref[h * H:(h + 1) * H, :],
                                  preferred_element_type=jnp.float32)
        attn = attn + battn_ref[...]                                  # dropout(0)=id

        x2 = x_q + attn                                               # residual 1

        xn2 = _layernorm(x2, g2_ref[...], be2_ref[...])
        hdn = (jnp.dot(xn2.astype(compute_dtype), w1_ref[...],
                       preferred_element_type=jnp.float32) + b1_ref[...])
        hdn = _gelu_tanh(hdn)
        mlp = (jnp.dot(hdn.astype(compute_dtype), w2_ref[...],
                       preferred_element_type=jnp.float32) + b2_ref[...])

        out_ref[...] = (x2 + mlp).astype(out_ref.dtype)               # residual 2


def _pick_tile(n, target):
    """Largest divisor of n that is <= target and a multiple of 8 (else full axis)."""
    if n <= target:
        return n
    for t in range(target, 7, -1):
        if n % t == 0 and t % 8 == 0:
            return t
    return n


def prepare_params(raw, *, head_dim, compute_dtype=jnp.bfloat16):
    """Host-side fusion: one QKV weight (scale folded into Wq/bq), merge Linear
    folded into the output projection, matmul weights cast to bf16."""
    (g1, be1, wq, bq, wk, bk, wv, bv, wm, bm, wp, bp,
     g2, be2, w1, b1, w2, b2) = raw
    KV, Q, E, H = wq.shape
    NH = KV * Q
    scale = 1.0 / math.sqrt(head_dim)

    wq_all = jnp.transpose(wq, (2, 0, 1, 3)).reshape(E, NH * H) * scale
    bq_all = bq.reshape(1, NH * H) * scale
    wk_all = jnp.transpose(wk, (1, 0, 2)).reshape(E, KV * H)
    bk_all = bk.reshape(1, KV * H)
    wv_all = jnp.transpose(wv, (1, 0, 2)).reshape(E, KV * H)
    bv_all = bv.reshape(1, KV * H)
    wqkv = jnp.concatenate([wq_all, wk_all, wv_all], axis=1).astype(compute_dtype)
    bqkv = jnp.concatenate([bq_all, bk_all, bv_all], axis=1).astype(jnp.float32)

    # Fold per-branch merge Linear (Q*H -> H) into project_outputs (KV*H -> E).
    w_attn = jnp.concatenate(
        [wm[b] @ wp[b * H:(b + 1) * H, :] for b in range(KV)], axis=0)  # (NH*H, E)
    b_attn = bp + sum(bm[b] @ wp[b * H:(b + 1) * H, :] for b in range(KV))  # (1, E)

    return (g1.astype(jnp.float32), be1.astype(jnp.float32),
            wqkv, bqkv,
            w_attn.astype(compute_dtype), b_attn.astype(jnp.float32),
            g2.astype(jnp.float32), be2.astype(jnp.float32),
            w1.astype(compute_dtype), b1.astype(jnp.float32),
            w2.astype(compute_dtype), b2.astype(jnp.float32))


def gq_attention_block(x, fused_params, *, num_kv_heads, num_queries_per_group,
                       head_dim, q_tile=128, kv_tile=128,
                       compute_dtype=jnp.bfloat16):
    assert x.ndim == 3 and x.shape[0] == 1, \
        "module forward only well-defined for batch==1"
    x2d = x[0]
    P, E = x2d.shape
    KV, Q, H = num_kv_heads, num_queries_per_group, head_dim
    NH = KV * Q
    (g1, be1, wqkv, bqkv, w_attn, b_attn, g2, be2, w1, b1, w2, b2) = fused_params
    hidden = w1.shape[1]

    tq = _pick_tile(P, q_tile)      # stage-1 row tile == stage-2 query tile
    tkv = _pick_tile(P, kv_tile)
    ni, nj = P // tq, P // tkv

    def full1(a):
        return pl.BlockSpec(a.shape, lambda i, nd=a.ndim: (0,) * nd)

    def full2(a):
        return pl.BlockSpec(a.shape, lambda i, j, nd=a.ndim: (0,) * nd)

    cp = pltpu.CompilerParams(
        dimension_semantics=("parallel",),
        vmem_limit_bytes=56 * 1024 * 1024,   # safe on v7x (64 MiB); plenty on v5e/v6e
    )

    # ---------------- stage 1: LN + fused QKV projection ----------------
    qkv_kernel = functools.partial(
        qkv_proj_kernel, num_kv_heads=KV, num_queries_per_group=Q,
        head_dim=H, compute_dtype=compute_dtype)
    q2, kT, v3 = pl.pallas_call(
        qkv_kernel,
        out_shape=(jax.ShapeDtypeStruct((NH * P, H), compute_dtype),
                   jax.ShapeDtypeStruct((KV * H, P), compute_dtype),
                   jax.ShapeDtypeStruct((KV, P, H), compute_dtype)),
        grid_spec=pltpu.PrefetchScalarGridSpec(
            num_scalar_prefetch=0,
            grid=(ni,),
            in_specs=[pl.BlockSpec((tq, E), lambda i: (i, 0)),
                      full1(g1), full1(be1), full1(wqkv), full1(bqkv)],
            out_specs=(pl.BlockSpec((NH * tq, H), lambda i: (i, 0)),
                       pl.BlockSpec((KV * H, tq), lambda i: (0, i)),
                       pl.BlockSpec((KV, tq, H), lambda i: (0, i, 0))),
        ),
        compiler_params=cp,
    )(x2d, g1, be1, wqkv, bqkv)

    # ------------- stage 2: attention + projection + residual + MLP -------------
    attn_kernel = functools.partial(
        gqa_attn_mlp_kernel, num_kv_heads=KV, num_queries_per_group=Q,
        head_dim=H, compute_dtype=compute_dtype)
    out = pl.pallas_call(
        attn_kernel,
        out_shape=jax.ShapeDtypeStruct((P, E), jnp.float32),
        grid_spec=pltpu.PrefetchScalarGridSpec(
            num_scalar_prefetch=0,
            grid=(ni, nj),
            in_specs=[
                pl.BlockSpec((tq, E), lambda i, j: (i, 0)),        # x (residual)
                pl.BlockSpec((NH * tq, H), lambda i, j: (i, 0)),   # q, row-stacked
                pl.BlockSpec((KV * H, tkv), lambda i, j: (0, j)),  # K^T
                pl.BlockSpec((KV, tkv, H), lambda i, j: (0, j, 0)),  # V
                full2(g2), full2(be2), full2(w_attn), full2(b_attn),
                full2(w1), full2(b1), full2(w2), full2(b2),
            ],
            out_specs=pl.BlockSpec((tq, E), lambda i, j: (i, 0)),
            scratch_shapes=[
                pltpu.VMEM((NH * tq, H + 2), jnp.float32),  # [acc | m | l]
            ],
        ),
        compiler_params=pltpu.CompilerParams(
            dimension_semantics=("parallel", "arbitrary"),
            vmem_limit_bytes=56 * 1024 * 1024,
        ),
    )(x2d, q2, kT, v3, g2, be2, w_attn, b_attn, w1, b1, w2, b2)
    return out[None]


def init_params(key, embed_dim, hidden_dim, num_query_heads, num_queries_per_group):
    H = embed_dim // num_query_heads
    KV = num_query_heads // num_queries_per_group
    Q = num_queries_per_group
    ks = jax.random.split(key, 14)

    def w(k, shape):
        return jax.random.normal(k, shape, jnp.float32) * 0.05

    g1 = jnp.ones((1, embed_dim), jnp.float32)
    be1 = jnp.zeros((1, embed_dim), jnp.float32)
    g2 = jnp.ones((1, embed_dim), jnp.float32)
    be2 = jnp.zeros((1, embed_dim), jnp.float32)

    wq = w(ks[0], (KV, Q, embed_dim, H))
    bq = w(ks[1], (KV, Q, 1, H))
    wk = w(ks[2], (KV, embed_dim, H))
    bk = w(ks[3], (KV, 1, H))
    wv = w(ks[4], (KV, embed_dim, H))
    bv = w(ks[5], (KV, 1, H))
    wm = w(ks[6], (KV, Q * H, H))
    bm = w(ks[7], (KV, 1, H))
    wp = w(ks[8], (KV * H, embed_dim))
    bp = w(ks[9], (1, embed_dim))
    w1 = w(ks[10], (embed_dim, hidden_dim))
    bb1 = w(ks[11], (1, hidden_dim))
    w2 = w(ks[12], (hidden_dim, embed_dim))
    bb2 = w(ks[13], (1, embed_dim))

    return (g1, be1, wq, bq, wk, bk, wv, bv, wm, bm, wp, bp, g2, be2, w1, bb1, w2, bb2)


def _reference(x2d, fused_params, *, KV, Q, H):
    """Pure-JAX f32 reference using the same fused parameters."""
    (g1, be1, wqkv, bqkv, w_attn, b_attn, g2, be2, w1, b1, w2, b2) = [
        p.astype(jnp.float32) for p in fused_params]
    NH = KV * Q
    xn = _layernorm(x2d, g1, be1)
    qkv = xn @ wqkv + bqkv
    q = qkv[:, :NH * H]
    k = qkv[:, NH * H:(NH + KV) * H]
    v = qkv[:, (NH + KV) * H:]
    heads = []
    for b in range(KV):
        k_b = k[:, b * H:(b + 1) * H]
        v_b = v[:, b * H:(b + 1) * H]
        for qi in range(Q):
            hidx = b * Q + qi
            q_h = q[:, hidx * H:(hidx + 1) * H]
            s = q_h @ k_b.T                     # scale already folded into Wq/bq
            p = jax.nn.softmax(s, axis=-1)
            heads.append(p @ v_b)
    cat = jnp.concatenate(heads, axis=-1)
    attn = cat @ w_attn + b_attn
    x2 = x2d + attn
    xn2 = _layernorm(x2, g2, be2)
    h = _gelu_tanh(xn2 @ w1 + b1)
    return x2 + h @ w2 + b2


if __name__ == "__main__":
    embed_dim = 64
    hidden_dim = 128
    num_query_heads = 8
    num_queries_per_group = 2
    seq_len = 256
    batch = 1

    head_dim = embed_dim // num_query_heads                  # 8
    num_kv_heads = num_query_heads // num_queries_per_group  # 4

    key = jax.random.PRNGKey(0)
    kx, kp = jax.random.split(key)
    x = jax.random.normal(kx, (batch, seq_len, embed_dim), jnp.float32)
    raw = init_params(kp, embed_dim, hidden_dim, num_query_heads, num_queries_per_group)
    params = prepare_params(raw, head_dim=head_dim, compute_dtype=jnp.bfloat16)

    out = gq_attention_block(
        x, params,
        num_kv_heads=num_kv_heads,
        num_queries_per_group=num_queries_per_group,
        head_dim=head_dim,
    )
    jax.block_until_ready(out)
    assert out.shape == (batch, seq_len, embed_dim) and out.dtype == jnp.float32
    assert bool(jnp.all(jnp.isfinite(out)))

    ref = _reference(x[0], params, KV=num_kv_heads, Q=num_queries_per_group, H=head_dim)
    max_err = float(jnp.max(jnp.abs(out[0] - ref)))
    assert max_err < 5e-2, f"max |err| vs reference = {max_err}"
    print("KERNEL_OK")
</pallas_src>

<mosaic_0001>
module attributes {stable_mosaic.version = 11 : i64} {
  func.func @qkv_proj_kernel(%arg0: i32, %arg1: memref<128x64xf32, #tpu.memory_space<vmem>>, %arg2: memref<1x64xf32, #tpu.memory_space<vmem>>, %arg3: memref<1x64xf32, #tpu.memory_space<vmem>>, %arg4: memref<64x128xbf16, #tpu.memory_space<vmem>>, %arg5: memref<1x128xf32, #tpu.memory_space<vmem>>, %arg6: memref<1024x8xbf16, #tpu.memory_space<vmem>>, %arg7: memref<32x128xbf16, #tpu.memory_space<vmem>>, %arg8: memref<4x128x8xbf16, #tpu.memory_space<vmem>>) attributes {dimension_semantics = [#tpu.dimension_semantics<parallel>], iteration_bounds = array<i64: 2>, scalar_prefetch = 0 : i64, scratch_operands = 0 : i64, tpu.core_type = #tpu.core_type<tc>, window_params = [{transform_indices = @transform_0, window_bounds = array<i64: 128, 64>}, {pipeline_mode = #tpu.pipeline_mode<synchronous>, transform_indices = @transform_1, window_bounds = array<i64: 1, 64>}, {pipeline_mode = #tpu.pipeline_mode<synchronous>, transform_indices = @transform_2, window_bounds = array<i64: 1, 64>}, {pipeline_mode = #tpu.pipeline_mode<synchronous>, transform_indices = @transform_3, window_bounds = array<i64: 64, 128>}, {pipeline_mode = #tpu.pipeline_mode<synchronous>, transform_indices = @transform_4, window_bounds = array<i64: 1, 128>}, {transform_indices = @transform_5, window_bounds = array<i64: 1024, 8>}, {transform_indices = @transform_6, window_bounds = array<i64: 32, 128>}, {transform_indices = @transform_7, window_bounds = array<i64: 4, 128, 8>}]} {
    %c0 = arith.constant 0 : index
    %c0_0 = arith.constant 0 : index
    %0 = vector.load %arg1[%c0, %c0_0] : memref<128x64xf32, #tpu.memory_space<vmem>>, vector<128x64xf32>
    %c0_1 = arith.constant 0 : index
    %c0_2 = arith.constant 0 : index
    %1 = vector.load %arg2[%c0_1, %c0_2] : memref<1x64xf32, #tpu.memory_space<vmem>>, vector<1x64xf32>
    %c0_3 = arith.constant 0 : index
    %c0_4 = arith.constant 0 : index
    %2 = vector.load %arg3[%c0_3, %c0_4] : memref<1x64xf32, #tpu.memory_space<vmem>>, vector<1x64xf32>
    %cst = arith.constant dense<0.000000e+00> : vector<128xf32>
    %3 = vector.multi_reduction <add>, %0, %cst [1] : vector<128x64xf32> to vector<128xf32>
    %4 = vector.shape_cast %3 : vector<128xf32> to vector<128x1xf32>
    %cst_5 = arith.constant 6.400000e+01 : f32
    %5 = vector.broadcast %cst_5 : f32 to vector<128x1xf32>
    %6 = arith.divf %4, %5 : vector<128x1xf32>
    %7 = vector.broadcast %6 : vector<128x1xf32> to vector<128x64xf32>
    %8 = arith.subf %0, %7 : vector<128x64xf32>
    %9 = arith.mulf %8, %8 : vector<128x64xf32>
    %cst_6 = arith.constant dense<0.000000e+00> : vector<128xf32>
    %10 = vector.multi_reduction <add>, %9, %cst_6 [1] : vector<128x64xf32> to vector<128xf32>
    %11 = vector.shape_cast %10 : vector<128xf32> to vector<128x1xf32>
    %cst_7 = arith.constant 6.400000e+01 : f32
    %12 = vector.broadcast %cst_7 : f32 to vector<128x1xf32>
    %13 = arith.divf %11, %12 : vector<128x1xf32>
    %14 = vector.broadcast %6 : vector<128x1xf32> to vector<128x64xf32>
    %15 = arith.subf %0, %14 : vector<128x64xf32>
    %cst_8 = arith.constant 9.99999997E-7 : f32
    %16 = vector.broadcast %cst_8 : f32 to vector<128x1xf32>
    %17 = arith.addf %13, %16 : vector<128x1xf32>
    %18 = math.rsqrt %17 : vector<128x1xf32>
    %19 = vector.broadcast %18 : vector<128x1xf32> to vector<128x64xf32>
    %20 = arith.mulf %15, %19 : vector<128x64xf32>
    %21 = vector.broadcast %1 : vector<1x64xf32> to vector<128x64xf32>
    %22 = arith.mulf %20, %21 : vector<128x64xf32>
    %23 = vector.broadcast %2 : vector<1x64xf32> to vector<128x64xf32>
    %24 = arith.addf %22, %23 : vector<128x64xf32>
    %25 = arith.truncf %24 : vector<128x64xf32> to vector<128x64xbf16>
    %c0_9 = arith.constant 0 : index
    %c0_10 = arith.constant 0 : index
    %26 = vector.load %arg4[%c0_9, %c0_10] : memref<64x128xbf16, #tpu.memory_space<vmem>>, vector<64x128xbf16>
    %cst_11 = arith.constant dense<0.000000e+00> : vector<128x128xf32>
    %27 = tpu.matmul %25, %26, %cst_11 {dimension_numbers = #tpu.dot_dimension_numbers<[1], [0], [0], [1], [0, 0, 1, 1], [], []>} : vector<128x64xbf16>, vector<64x128xbf16>, vector<128x128xf32> -> vector<128x128xf32>
    %c0_12 = arith.constant 0 : index
    %c0_13 = arith.constant 0 : index
    %28 = vector.load %arg5[%c0_12, %c0_13] : memref<1x128xf32, #tpu.memory_space<vmem>>, vector<1x128xf32>
    %29 = vector.broadcast %28 : vector<1x128xf32> to vector<128x128xf32>
    %30 = arith.addf %27, %29 : vector<128x128xf32>
    %31 = arith.truncf %30 : vector<128x128xf32> to vector<128x128xbf16>
    %32 = vector.extract_strided_slice %31 {offsets = [0, 0], sizes = [128, 8], strides = [1, 1]} : vector<128x128xbf16> to vector<128x8xbf16>
    %c0_14 = arith.constant 0 : index
    %c0_15 = arith.constant 0 : index
    %33 = vector.load %arg6[%c0_14, %c0_15] : memref<1024x8xbf16, #tpu.memory_space<vmem>>, vector<128x8xbf16>
    tpu.vector_store %arg6[%c0_14, %c0_15], %32 {strides = array<i32>} : memref<1024x8xbf16, #tpu.memory_space<vmem>>, vector<128x8xbf16>,
    %34 = vector.extract_strided_slice %31 {offsets = [0, 8], sizes = [128, 8], strides = [1, 1]} : vector<128x128xbf16> to vector<128x8xbf16>
    %c128 = arith.constant 128 : index
    %c0_16 = arith.constant 0 : index
    %35 = vector.load %arg6[%c128, %c0_16] : memref<1024x8xbf16, #tpu.memory_space<vmem>>, vector<128x8xbf16>
    tpu.vector_store %arg6[%c128, %c0_16], %34 {strides = array<i32>} : memref<1024x8xbf16, #tpu.memory_space<vmem>>, vector<128x8xbf16>,
    %36 = vector.extract_strided_slice %31 {offsets = [0, 16], sizes = [128, 8], strides = [1, 1]} : vector<128x128xbf16> to vector<128x8xbf16>
    %c256 = arith.constant 256 : index
    %c0_17 = arith.constant 0 : index
    %37 = vector.load %arg6[%c256, %c0_17] : memref<1024x8xbf16, #tpu.memory_space<vmem>>, vector<128x8xbf16>
    tpu.vector_store %arg6[%c256, %c0_17], %36 {strides = array<i32>} : memref<1024x8xbf16, #tpu.memory_space<vmem>>, vector<128x8xbf16>,
    %38 = vector.extract_strided_slice %31 {offsets = [0, 24], sizes = [128, 8], strides = [1, 1]} : vector<128x128xbf16> to vector<128x8xbf16>
    %c384 = arith.constant 384 : index
    %c0_18 = arith.constant 0 : index
    %39 = vector.load %arg6[%c384, %c0_18] : memref<1024x8xbf16, #tpu.memory_space<vmem>>, vector<128x8xbf16>
    tpu.vector_store %arg6[%c384, %c0_18], %38 {strides = array<i32>} : memref<1024x8xbf16, #tpu.memory_space<vmem>>, vector<128x8xbf16>,
    %40 = vector.extract_strided_slice %31 {offsets = [0, 32], sizes = [128, 8], strides = [1, 1]} : vector<128x128xbf16> to vector<128x8xbf16>
    %c512 = arith.constant 512 : index
    %c0_19 = arith.constant 0 : index
    %41 = vector.load %arg6[%c512, %c0_19] : memref<1024x8xbf16, #tpu.memory_space<vmem>>, vector<128x8xbf16>
    tpu.vector_store %arg6[%c512, %c0_19], %40 {strides = array<i32>} : memref<1024x8xbf16, #tpu.memory_space<vmem>>, vector<128x8xbf16>,
    %42 = vector.extract_strided_slice %31 {offsets = [0, 40], sizes = [128, 8], strides = [1, 1]} : vector<128x128xbf16> to vector<128x8xbf16>
    %c640 = arith.constant 640 : index
    %c0_20 = arith.constant 0 : index
    %43 = vector.load %arg6[%c640, %c0_20] : memref<1024x8xbf16, #tpu.memory_space<vmem>>, vector<128x8xbf16>
    tpu.vector_store %arg6[%c640, %c0_20], %42 {strides = array<i32>} : memref<1024x8xbf16, #tpu.memory_space<vmem>>, vector<128x8xbf16>,
    %44 = vector.extract_strided_slice %31 {offsets = [0, 48], sizes = [128, 8], strides = [1, 1]} : vector<128x128xbf16> to vector<128x8xbf16>
    %c768 = arith.constant 768 : index
    %c0_21 = arith.constant 0 : index
    %45 = vector.load %arg6[%c768, %c0_21] : memref<1024x8xbf16, #tpu.memory_space<vmem>>, vector<128x8xbf16>
    tpu.vector_store %arg6[%c768, %c0_21], %44 {strides = array<i32>} : memref<1024x8xbf16, #tpu.memory_space<vmem>>, vector<128x8xbf16>,
    %46 = vector.extract_strided_slice %31 {offsets = [0, 56], sizes = [128, 8], strides = [1, 1]} : vector<128x128xbf16> to vector<128x8xbf16>
    %c896 = arith.constant 896 : index
    %c0_22 = arith.constant 0 : index
    %47 = vector.load %arg6[%c896, %c0_22] : memref<1024x8xbf16, #tpu.memory_space<vmem>>, vector<128x8xbf16>
    tpu.vector_store %arg6[%c896, %c0_22], %46 {strides = array<i32>} : memref<1024x8xbf16, #tpu.memory_space<vmem>>, vector<128x8xbf16>,
    %48 = vector.extract_strided_slice %30 {offsets = [0, 64], sizes = [128, 32], strides = [1, 1]} : vector<128x128xf32> to vector<128x32xf32>
    %49 = tpu.transpose %48, [1, 0] : vector<128x32xf32> -> vector<32x128xf32>
    %50 = arith.truncf %49 : vector<32x128xf32> to vector<32x128xbf16>
    %c0_23 = arith.constant 0 : index
    %c0_24 = arith.constant 0 : index
    %51 = vector.load %arg7[%c0_23, %c0_24] : memref<32x128xbf16, #tpu.memory_space<vmem>>, vector<32x128xbf16>
    tpu.vector_store %arg7[%c0_23, %c0_24], %50 {strides = array<i32>} : memref<32x128xbf16, #tpu.memory_space<vmem>>, vector<32x128xbf16>,
    %52 = vector.extract_strided_slice %31 {offsets = [0, 96], sizes = [128, 8], strides = [1, 1]} : vector<128x128xbf16> to vector<128x8xbf16>
    %c0_25 = arith.constant 0 : index
    %c0_26 = arith.constant 0 : index
    %c0_27 = arith.constant 0 : index
    %53 = vector.load %arg8[%c0_25, %c0_26, %c0_27] : memref<4x128x8xbf16, #tpu.memory_space<vmem>>, vector<1x128x8xbf16>
    %54 = vector.shape_cast %53 : vector<1x128x8xbf16> to vector<128x8xbf16>
    %55 = vector.shape_cast %52 : vector<128x8xbf16> to vector<1x128x8xbf16>
    tpu.vector_store %arg8[%c0_25, %c0_26, %c0_27], %55 {strides = array<i32>} : memref<4x128x8xbf16, #tpu.memory_space<vmem>>, vector<1x128x8xbf16>,
    %56 = vector.extract_strided_slice %31 {offsets = [0, 104], sizes = [128, 8], strides = [1, 1]} : vector<128x128xbf16> to vector<128x8xbf16>
    %c1 = arith.constant 1 : index
    %c0_28 = arith.constant 0 : index
    %c0_29 = arith.constant 0 : index
    %57 = vector.load %arg8[%c1, %c0_28, %c0_29] : memref<4x128x8xbf16, #tpu.memory_space<vmem>>, vector<1x128x8xbf16>
    %58 = vector.shape_cast %57 : vector<1x128x8xbf16> to vector<128x8xbf16>
    %59 = vector.shape_cast %56 : vector<128x8xbf16> to vector<1x128x8xbf16>
    tpu.vector_store %arg8[%c1, %c0_28, %c0_29], %59 {strides = array<i32>} : memref<4x128x8xbf16, #tpu.memory_space<vmem>>, vector<1x128x8xbf16>,
    %60 = vector.extract_strided_slice %31 {offsets = [0, 112], sizes = [128, 8], strides = [1, 1]} : vector<128x128xbf16> to vector<128x8xbf16>
    %c2 = arith.constant 2 : index
    %c0_30 = arith.constant 0 : index
    %c0_31 = arith.constant 0 : index
    %61 = vector.load %arg8[%c2, %c0_30, %c0_31] : memref<4x128x8xbf16, #tpu.memory_space<vmem>>, vector<1x128x8xbf16>
    %62 = vector.shape_cast %61 : vector<1x128x8xbf16> to vector<128x8xbf16>
    %63 = vector.shape_cast %60 : vector<128x8xbf16> to vector<1x128x8xbf16>
    tpu.vector_store %arg8[%c2, %c0_30, %c0_31], %63 {strides = array<i32>} : memref<4x128x8xbf16, #tpu.memory_space<vmem>>, vector<1x128x8xbf16>,
    %64 = vector.extract_strided_slice %31 {offsets = [0, 120], sizes = [128, 8], strides = [1, 1]} : vector<128x128xbf16> to vector<128x8xbf16>
    %c3 = arith.constant 3 : index
    %c0_32 = arith.constant 0 : index
    %c0_33 = arith.constant 0 : index
    %65 = vector.load %arg8[%c3, %c0_32, %c0_33] : memref<4x128x8xbf16, #tpu.memory_space<vmem>>, vector<1x128x8xbf16>
    %66 = vector.shape_cast %65 : vector<1x128x8xbf16> to vector<128x8xbf16>
    %67 = vector.shape_cast %64 : vector<128x8xbf16> to vector<1x128x8xbf16>
    tpu.vector_store %arg8[%c3, %c0_32, %c0_33], %67 {strides = array<i32>} : memref<4x128x8xbf16, #tpu.memory_space<vmem>>, vector<1x128x8xbf16>,
    return
  }
  func.func @transform_0(%arg0: i32) -> (i32, i32) {
    %c0_i32 = arith.constant 0 : i32
    %c0_i32_0 = arith.constant 0 : i32
    return %arg0, %c0_i32 : i32, i32
  }
  func.func @transform_1(%arg0: i32) -> (i32, i32) {
    %c0_i32 = arith.constant 0 : i32
    %c0_i32_0 = arith.constant 0 : i32
    %c0_i32_1 = arith.constant 0 : i32
    return %c0_i32, %c0_i32_0 : i32, i32
  }
  func.func @transform_2(%arg0: i32) -> (i32, i32) {
    %c0_i32 = arith.constant 0 : i32
    %c0_i32_0 = arith.constant 0 : i32
    %c0_i32_1 = arith.constant 0 : i32
    return %c0_i32, %c0_i32_0 : i32, i32
  }
  func.func @transform_3(%arg0: i32) -> (i32, i32) {
    %c0_i32 = arith.constant 0 : i32
    %c0_i32_0 = arith.constant 0 : i32
    %c0_i32_1 = arith.constant 0 : i32
    return %c0_i32, %c0_i32_0 : i32, i32
  }
  func.func @transform_4(%arg0: i32) -> (i32, i32) {
    %c0_i32 = arith.constant 0 : i32
    %c0_i32_0 = arith.constant 0 : i32
    %c0_i32_1 = arith.constant 0 : i32
    return %c0_i32, %c0_i32_0 : i32, i32
  }
  func.func @transform_5(%arg0: i32) -> (i32, i32) {
    %c0_i32 = arith.constant 0 : i32
    %c0_i32_0 = arith.constant 0 : i32
    return %arg0, %c0_i32 : i32, i32
  }
  func.func @transform_6(%arg0: i32) -> (i32, i32) {
    %c0_i32 = arith.constant 0 : i32
    %c0_i32_0 = arith.constant 0 : i32
    return %c0_i32, %arg0 : i32, i32
  }
  func.func @transform_7(%arg0: i32) -> (i32, i32, i32) {
    %c0_i32 = arith.constant 0 : i32
    %c0_i32_0 = arith.constant 0 : i32
    %c0_i32_1 = arith.constant 0 : i32
    return %c0_i32, %arg0, %c0_i32_0 : i32, i32, i32
  }
}

</mosaic_0001>

<bundles_post_ra>
// kernel: tpu_custom_call.1
= control target key start
LH: loop header
LB: loop body
LE: loop exit
PB: predicated region body
PF: predicated region fallthrough
CT: control target
= control target key end

     0   :  { %s3854_s0 = inlined_call_operand.vmem [shape: f32[256,64], index: 0, kind: input, shape index: {}]   ;;  %s3855_s1 = inlined_call_operand.vmem [shape: f32[1,64], index: 1, kind: input, shape index: {}]   ;;  %s3856_s2 = inlined_call_operand.vmem [shape: f32[1,64], index: 2, kind: input, shape index: {}]   ;;  %s3857_s3 = inlined_call_operand.vmem [shape: bf16[64,128], index: 3, kind: input, shape index: {}]   ;;  %s3858_s4 = inlined_call_operand.vmem [shape: f32[1,128], index: 4, kind: input, shape index: {}]   ;;  %s3859_s5 = inlined_call_operand.vmem [shape: bf16[2048,8], index: 5, kind: output, shape index: {0}]   ;;  %s3860_s6 = inlined_call_operand.hbm [shape: bf16[32,256], index: 6, kind: output, shape index: {1}]   ;;  %s3861_s7 = inlined_call_operand.vmem [shape: bf16[4,256,8], index: 7, kind: output, shape index: {2}]  }
   0x1   :  { %3873 = sst [smem:[#allocation6_spill]] %s3854_s0 }
   0x2   :  { %13 = vsyncpa [#allocation3], 0 }
   0x3   :  { %15 = vsyncpa [#allocation3 + $0x1], 0  ;;  %s2507_s24 = smov 0   ;;  %s2509_s25 = smov 0  }
   0x4   :  { %s2511_s26 = smov 0   ;;  %s2513_s27 = smov 0  }
   0x5 LB: > { %s2528_s28 = sadd.s32 4294967295, %s2450_s27   ;;  %s2085_s29 = sadd.s32 4294967294, %s2450_s27   ;;  %s2450_s27 = sphi %s2513_s27, %s3887_s27   ;;  %s2446_s26 = sphi %s2511_s26, %s3886_s26   ;;  %s2442_s25 = sphi %s2509_s25, %s3885_s25   ;;  %s2438_s24 = sphi %s2507_s24, %s3884_s24  }
   0x6   : > { %s2532_s30 = sadd.s32 1, %s2450_s27   ;;  %s164_s8 = sadd.s32 1, %s2446_s26 }
   0x7   : > { %s161_s9 = ssub.s32 %s2450_s27, %s2532_s30  ;;  %p174_p0 = scmp.ne.s32.totalorder %s2446_s26, %s2442_s25 }
   0x8   : > { %p162_p1 = scmp.eq.s32.totalorder %s161_s9, 0  ;;  %p175_p2 = scmp.eq.s32.totalorder %s2528_s28, 1 }
   0x9   : > { %p180_p3 = scmp.ne.s32.totalorder %s2442_s25, %s2438_s24  ;;  %p181_p4 = scmp.eq.s32.totalorder %s2085_s29, 1 }
   0xa   : > { %s2543_s10 = scalar_select %p162_p1, %s2446_s26, %s164_s8  }
   0xb   : > { %p2545_p5 = por %p175_p2, %p174_p0  ;;  %p2549_p6 = por %p181_p4, %p180_p3 }
   0xc   : > { %p2088_p7 = scmp.ge.s32.totalorder %s2450_s27, 1  ;;  %p246_p8 = scmp.lt.s32.totalorder %s2450_s27, 3 }
   0xe   : > { %p247_p9 = pnand %p2088_p7, %p246_p8 }
   0xf   : > { %s2091_s13 = sshll.u32 (!%p247_p9), %s2528_s28, 4  ;;  %s3876_s0 = sld [smem:[#allocation6_spill]] (!%p247_p9) }
  0x10   : > { %250 = sbr.rel (%p247_p9) target bundleno = 1147 (0x47b), region = 40  ;;  %p288_p10 = scmp.lt.s32.totalorder (!%p247_p9), %s2091_s13, 31 }
  0x11   : > { %s2093_s16 = sshll.u32 (!%p247_p9), %s2528_s28, 7  ;;  %s3868_s23 = smov (!%p247_p9), 120  }
  0x12   : > { %p294_p11 = scmp.lt.s32.totalorder (!%p247_p9), %s2093_s16, 255  ;;  %s2453_s29 = smov (!%p247_p9), 32  }
  0x13   : > { %s3870_s8 = smov (!%p247_p9), 24   ;;  %s3862_s9 = smov (!%p247_p9), 112  }
  0x14   : > { %s2458_s15 = smov (!%p247_p9), 8   ;;  %s2461_s18 = smov (!%p247_p9), 88  }
  0x15   : > { %s3889_s13 = smov (!%p288_p10, %s2091_s13), 31  ;;  %vm319_vm0 = vcmask 523264   ;;  %s3891_s16 = smov (!%p294_p11, %s2093_s16), 255  ;;  %vm805_vm1 = vcmask 60416  }
  0x16   : > { %s2092_s14 = sshll.u32 %s3889_s13, 3  ;;  %s2094_s19 = sshll.u32 %s3891_s16, 2 }
  0x17   : > { %s2559_s17 = scalar_lea.vmem %s3876_s0, %s2092_s14  ;;  %s2803_s22 = scalar_lea.vmem %s3859_s5, %s2094_s19 }
  0x18   : > { %v301_v0 = vld [vmem:[%s2559_s17] sm:$0xff]  ;;  %v303_v1 = vld [vmem:[%s2559_s17 + $0x10] sm:$0xff]  ;;  %v302_v2 = vld [vmem:[%s2559_s17 + $0x8] sm:$0xff]  ;;  %s2456_s13 = smov 16   ;;  %s3864_s14 = smov 104  }
  0x19   : > { %v320_v3 = vsel %vm319_vm0, %v301_v0, 0.0  ;;  %v326_v4 = vsel %vm319_vm0, %v303_v1, 0.0  ;;  %v304_v5 = vld [vmem:[%s2559_s17 + $0x18] sm:$0xff]  ;;  %v323_v6 = vsel %vm319_vm0, %v302_v2, 0.0  ;;  %v305_v8 = vld [vmem:[%s2559_s17 + $0x20] sm:$0xff]  ;;  %v306_v9 = vld [vmem:[%s2559_s17 + $0x28] sm:$0xff] }
  0x1a   : > { %321 = vadd.xlane.f32.xlu0 %v320_v3  ;;  %327 = vadd.xlane.f32.xlu1 %v326_v4  ;;  %v329_v7 = vsel %vm319_vm0, %v304_v5, 0.0  ;;  %v332_v10 = vsel %vm319_vm0, %v305_v8, 0.0  ;;  %v335_v11 = vsel %vm319_vm0, %v306_v9, 0.0  ;;  %v2574_v12 = vld [vmem:[%s2559_s17 + $0x30] sm:$0xff]  ;;  %v2577_v13 = vld [vmem:[%s2559_s17 + $0x38] sm:$0xff]  ;;  %v2584_v16 = vld [vmem:[%s2559_s17 + $0x40] sm:$0xff] }
  0x1b   : > { %v338_v14 = vsel %vm319_vm0, %v2574_v12, 0.0  ;;  %v341_v15 = vsel %vm319_vm0, %v2577_v13, 0.0  ;;  %v2587_v17 = vld [vmem:[%s2559_s17 + $0x48] sm:$0xff]  ;;  %v344_v18 = vsel %vm319_vm0, %v2584_v16, 0.0  ;;  %v2594_v20 = vld [vmem:[%s2559_s17 + $0x50] sm:$0xff]  ;;  %v2597_v21 = vld [vmem:[%s2559_s17 + $0x58] sm:$0xff] }
  0x1c   : > { %v347_v19 = vsel %vm319_vm0, %v2587_v17, 0.0  ;;  %v350_v22 = vsel %vm319_vm0, %v2594_v20, 0.0  ;;  %v353_v23 = vsel %vm319_vm0, %v2597_v21, 0.0  ;;  %v2604_v24 = vld [vmem:[%s2559_s17 + $0x60] sm:$0xff]  ;;  %v2607_v25 = vld [vmem:[%s2559_s17 + $0x68] sm:$0xff]  ;;  %v2614_v28 = vld [vmem:[%s2559_s17 + $0x70] sm:$0xff] }
  0x1d   : > { %v356_v26 = vsel %vm319_vm0, %v2604_v24, 0.0  ;;  %v359_v27 = vsel %vm319_vm0, %v2607_v25, 0.0  ;;  %v2617_v29 = vld [vmem:[%s2559_s17 + $0x78] sm:$0xff]  ;;  %v362_v30 = vsel %vm319_vm0, %v2614_v28, 0.0  ;;  %s2459_s16 = smov 96   ;;  %s3866_s17 = smov 64  }
  0x1e   : > { %324 = vadd.xlane.f32.xlu0 %v323_v6  ;;  %330 = vadd.xlane.f32.xlu1 %v329_v7  ;;  %v365_v31 = vsel %vm319_vm0, %v2617_v29, 0.0  ;;  %s2462_s19 = smov 80   ;;  %s2463_s20 = smov 72  }
  0x1f   : > { %s3072_s21 = sand.u32 1, %s2442_s25  }
  0x22   : > { %333 = vadd.xlane.f32.xlu0 %v332_v10  ;;  %336 = vadd.xlane.f32.xlu1 %v335_v11 }
  0x26   : > { %339 = vadd.xlane.f32.xlu0 %v338_v14  ;;  %342 = vadd.xlane.f32.xlu1 %v341_v15 }
  0x2a   : > { %345 = vadd.xlane.f32.xlu0 %v344_v18  ;;  %348 = vadd.xlane.f32.xlu1 %v347_v19 }
  0x2e   : > { %351 = vadd.xlane.f32.xlu0 %v350_v22  ;;  %354 = vadd.xlane.f32.xlu1 %v353_v23 }
  0x32   : > { %357 = vadd.xlane.f32.xlu0 %v356_v26  ;;  %360 = vadd.xlane.f32.xlu1 %v359_v27 }
  0x36   : > { %363 = vadd.xlane.f32.xlu0 %v362_v30  ;;  %366 = vadd.xlane.f32.xlu1 %v365_v31 }
  0xa3   : > { %v322_v32 = vpop.xlane.xlu0 %321  ;;  %v328_v33 = vpop.xlane.xlu1 %327 }
  0xa4   : > { %v369_v34 = vmul.f32 0.015625, %v322_v32  ;;  %v371_v35 = vmul.f32 0.015625, %v328_v33 }
  0xa6   : > { %v2623_v36 = vsub.f32 %v301_v0, %v369_v34  ;;  %v2625_v37 = vsub.f32 %v303_v1, %v371_v35 }
  0xa7   : > { %v325_v38 = vpop.xlane.xlu0 %324  ;;  %v331_v39 = vpop.xlane.xlu1 %330 }
  0xa8   : > { %v370_v40 = vmul.f32 0.015625, %v325_v38  ;;  %v372_v41 = vmul.f32 0.015625, %v331_v39  ;;  %v401_v42 = vmul.f32 %v2623_v36, %v2623_v36  ;;  %v403_v43 = vmul.f32 %v2625_v37, %v2625_v37 }
  0xaa   : > { %v2631_v44 = vsub.f32 %v302_v2, %v370_v40  ;;  %v2633_v45 = vsub.f32 %v304_v5, %v372_v41  ;;  %v417_v46 = vsel %vm319_vm0, %v401_v42, 0.0  ;;  %v423_v49 = vsel %vm319_vm0, %v403_v43, 0.0 }
  0xab   : > { %418 = vadd.xlane.f32.xlu0 %v417_v46  ;;  %v334_v47 = vpop.xlane.xlu0 %333  ;;  %v337_v48 = vpop.xlane.xlu1 %336 }
  0xac   : > { %v373_v50 = vmul.f32 0.015625, %v334_v47  ;;  %v374_v51 = vmul.f32 0.015625, %v337_v48  ;;  %v402_v52 = vmul.f32 %v2631_v44, %v2631_v44  ;;  %v404_v53 = vmul.f32 %v2633_v45, %v2633_v45 }
  0xae   : > { %v2641_v54 = vsub.f32 %v305_v8, %v373_v50  ;;  %v2643_v55 = vsub.f32 %v306_v9, %v374_v51  ;;  %v420_v56 = vsel %vm319_vm0, %v402_v52, 0.0  ;;  %v426_v59 = vsel %vm319_vm0, %v404_v53, 0.0  ;;  %v2355_v53 = vld [vmem:[%s3857_s3 + $0x10] sm:$0xff]  }
  0xaf   : > { %424 = vadd.xlane.f32.xlu0 %v423_v49  ;;  %421 = vadd.xlane.f32.xlu1 %v420_v56  ;;  %v340_v57 = vpop.xlane.xlu0 %339  ;;  %v343_v58 = vpop.xlane.xlu1 %342  ;;  %v2356_v56 = vld [vmem:[%s3857_s3 + $0x8] sm:$0xff]  }
  0xb0   : > { %v375_v60 = vmul.f32 0.015625, %v340_v57  ;;  %v376_v61 = vmul.f32 0.015625, %v343_v58  ;;  %v405_v62 = vmul.f32 %v2641_v54, %v2641_v54  ;;  %v406_v63 = vmul.f32 %v2643_v55, %v2643_v55  ;;  %v2357_v57 = vld [vmem:[%s3857_s3] sm:$0xff]  }
  0xb2   : > { %v2652_v0 = vsub.f32 %v2574_v12, %v375_v60  ;;  %v2655_v1 = vsub.f32 %v2577_v13, %v376_v61  ;;  %v429_v2 = vsel %vm319_vm0, %v405_v62, 0.0  ;;  %v432_v5 = vsel %vm319_vm0, %v406_v63, 0.0 }
  0xb3   : > { %427 = vadd.xlane.f32.xlu1 %v426_v59  ;;  %430 = vadd.xlane.f32.xlu0 %v429_v2  ;;  %v346_v3 = vpop.xlane.xlu0 %345  ;;  %v349_v4 = vpop.xlane.xlu1 %348 }
  0xb4   : > { %v377_v6 = vmul.f32 0.015625, %v346_v3  ;;  %v378_v7 = vmul.f32 0.015625, %v349_v4  ;;  %v407_v8 = vmul.f32 %v2652_v0, %v2652_v0  ;;  %v408_v9 = vmul.f32 %v2655_v1, %v2655_v1 }
  0xb6   : > { %v2664_v10 = vsub.f32 %v2584_v16, %v377_v6  ;;  %v2667_v11 = vsub.f32 %v2587_v17, %v378_v7  ;;  %v435_v12 = vsel %vm319_vm0, %v407_v8, 0.0  ;;  %v438_v15 = vsel %vm319_vm0, %v408_v9, 0.0 }
  0xb7   : > { %433 = vadd.xlane.f32.xlu1 %v432_v5  ;;  %436 = vadd.xlane.f32.xlu0 %v435_v12  ;;  %v352_v13 = vpop.xlane.xlu0 %351  ;;  %v355_v14 = vpop.xlane.xlu1 %354 }
  0xb8   : > { %v379_v18 = vmul.f32 0.015625, %v352_v13  ;;  %v380_v19 = vmul.f32 0.015625, %v355_v14  ;;  %v409_v22 = vmul.f32 %v2664_v10, %v2664_v10  ;;  %v410_v16 = vmul.f32 %v2667_v11, %v2667_v11 }
  0xba   : > { %v2676_v23 = vsub.f32 %v2594_v20, %v379_v18  ;;  %v2679_v17 = vsub.f32 %v2597_v21, %v380_v19  ;;  %v441_v26 = vsel %vm319_vm0, %v409_v22, 0.0  ;;  %v444_v31 = vsel %vm319_vm0, %v410_v16, 0.0 }
  0xbb   : > { %439 = vadd.xlane.f32.xlu1 %v438_v15  ;;  %442 = vadd.xlane.f32.xlu0 %v441_v26  ;;  %v358_v27 = vpop.xlane.xlu0 %357  ;;  %v361_v30 = vpop.xlane.xlu1 %360 }
  0xbc   : > { %v381_v32 = vmul.f32 0.015625, %v358_v27  ;;  %v382_v33 = vmul.f32 0.015625, %v361_v30  ;;  %v411_v34 = vmul.f32 %v2676_v23, %v2676_v23  ;;  %v412_v20 = vmul.f32 %v2679_v17, %v2679_v17 }
  0xbe   : > { %v2688_v35 = vsub.f32 %v2604_v24, %v381_v32  ;;  %v2691_v21 = vsub.f32 %v2607_v25, %v382_v33  ;;  %v447_v38 = vsel %vm319_vm0, %v411_v34, 0.0  ;;  %v450_v41 = vsel %vm319_vm0, %v412_v20, 0.0  ;;  %v2728_v34 = vld [vmem:[%s3855_s1] ss:$0 sm:$0xff] }
  0xbf   : > { %445 = vadd.xlane.f32.xlu1 %v444_v31  ;;  %448 = vadd.xlane.f32.xlu0 %v447_v38  ;;  %v364_v39 = vpop.xlane.xlu0 %363  ;;  %v367_v40 = vpop.xlane.xlu1 %366 }
  0xc0   : > { %v383_v42 = vmul.f32 0.015625, %v364_v39  ;;  %v384_v43 = vmul.f32 0.015625, %v367_v40  ;;  %v413_v46 = vmul.f32 %v2688_v35, %v2688_v35  ;;  %v414_v24 = vmul.f32 %v2691_v21, %v2691_v21 }
  0xc2   : > { %v2700_v47 = vsub.f32 %v2614_v28, %v383_v42  ;;  %v2703_v25 = vsub.f32 %v2617_v29, %v384_v43  ;;  %v453_v48 = vsel %vm319_vm0, %v413_v46, 0.0  ;;  %v456_v49 = vsel %vm319_vm0, %v414_v24, 0.0  ;;  %v2354_v28 = vld [vmem:[%s3857_s3 + $0x18] sm:$0xff]  }
  0xc3   : > { %451 = vadd.xlane.f32.xlu1 %v450_v41  ;;  %454 = vadd.xlane.f32.xlu0 %v453_v48 }
  0xc4   : > { %v415_v50 = vmul.f32 %v2700_v47, %v2700_v47  ;;  %v416_v51 = vmul.f32 %v2703_v25, %v2703_v25  ;;  %2229 = vmatprep.subr.bf16.mxu0 %v2354_v28  ;;  %2253 = vmatprep.subr.bf16.mxu1 %v2354_v28 }
  0xc5   : > { %2230 = vmatpush3.bf16.msra.mxu0 %v2354_v28  ;;  %2257 = vmatpush3.bf16.msra.mxu1 %v2354_v28 }
  0xc6   : > { %v459_v52 = vsel %vm319_vm0, %v415_v50, 0.0  ;;  %v462_v29 = vsel %vm319_vm0, %v416_v51, 0.0  ;;  %2231 = vmatprep.subr.bf16.mxu0 %v2355_v53  ;;  %2254 = vmatprep.subr.bf16.mxu1 %v2355_v53 }
  0xc7   : > { %457 = vadd.xlane.f32.xlu1 %v456_v49  ;;  %460 = vadd.xlane.f32.xlu0 %v459_v52  ;;  %v2735_v49 = vld [vmem:[%s3856_s2] ss:$0 sm:$0xff] }
  0xc9   : > { %2232 = vmatpush3.bf16.msra.mxu0 %v2355_v53  ;;  %2258 = vmatpush3.bf16.msra.mxu1 %v2355_v53 }
  0xca   : > { %2233 = vmatprep.subr.bf16.mxu0 %v2356_v56  ;;  %2255 = vmatprep.subr.bf16.mxu1 %v2356_v56 }
  0xcb   : > { %463 = vadd.xlane.f32.xlu1 %v462_v29 }
  0xcd   : > { %2234 = vmatpush3.bf16.msra.mxu0 %v2356_v56  ;;  %2259 = vmatpush3.bf16.msra.mxu1 %v2356_v56 }
  0xce   : > { %2235 = vmatprep.subr.bf16.mxu0 %v2357_v57  ;;  %2256 = vmatprep.subr.bf16.mxu1 %v2357_v57 }
  0xd1   : > { %2236 = vmatpush3.bf16.msra.mxu0 %v2357_v57  ;;  %2260 = vmatpush3.bf16.msra.mxu1 %v2357_v57 }
 0x134   : > { %v419_v58 = vpop.xlane.xlu0 %418 }
 0x135   : > { %v465_v59 = vmul.f32 0.015625, %v419_v58 }
 0x137   : > { %v481_v60 = vadd.f32 1e-06, %v465_v59 }
 0x138   : > { %v422_v61 = vpop.xlane.xlu1 %421  ;;  %v425_v62 = vpop.xlane.xlu0 %424 }
 0x139   : > { %2358 = vrsqrt.f32 %v481_v60  ;;  %v466_v63 = vmul.f32 0.015625, %v422_v61  ;;  %v467_v2 = vmul.f32 0.015625, %v425_v62 }
 0x13b   : > { %v482_v3 = vadd.f32 1e-06, %v466_v63  ;;  %v483_v4 = vadd.f32 1e-06, %v467_v2 }
 0x13c   : > { %v428_v5 = vpop.xlane.xlu1 %427  ;;  %v431_v6 = vpop.xlane.xlu0 %430 }
 0x13d   : > { %2360 = vrsqrt.f32 %v482_v3  ;;  %v468_v7 = vmul.f32 0.015625, %v428_v5  ;;  %v469_v8 = vmul.f32 0.015625, %v431_v6 }
 0x13e   : > { %2362 = vrsqrt.f32 %v483_v4 }
 0x13f   : > { %v484_v9 = vadd.f32 1e-06, %v468_v7  ;;  %v485_v12 = vadd.f32 1e-06, %v469_v8 }
 0x140   : > { %v434_v13 = vpop.xlane.xlu1 %433  ;;  %v437_v14 = vpop.xlane.xlu0 %436 }
 0x141   : > { %2364 = vrsqrt.f32 %v484_v9  ;;  %v470_v15 = vmul.f32 0.015625, %v434_v13  ;;  %v471_v18 = vmul.f32 0.015625, %v437_v14 }
 0x142   : > { %2366 = vrsqrt.f32 %v485_v12 }
 0x143   : > { %v486_v19 = vadd.f32 1e-06, %v470_v15  ;;  %v487_v22 = vadd.f32 1e-06, %v471_v18 }
 0x144   : > { %v440_v16 = vpop.xlane.xlu1 %439  ;;  %v443_v26 = vpop.xlane.xlu0 %442 }
 0x145   : > { %2368 = vrsqrt.f32 %v486_v19  ;;  %v472_v27 = vmul.f32 0.015625, %v440_v16  ;;  %v473_v30 = vmul.f32 0.015625, %v443_v26 }
 0x146   : > { %v2359_v31 = vpop.eup %2358  ;;  %2370 = vrsqrt.f32 %v487_v22 }
 0x147   : > { %v488_v32 = vadd.f32 1e-06, %v472_v27  ;;  %v489_v33 = vadd.f32 1e-06, %v473_v30  ;;  %v513_v20 = vmul.f32 %v2359_v31, %v2623_v36 }
 0x148   : > { %v446_v38 = vpop.xlane.xlu1 %445  ;;  %v449_v39 = vpop.xlane.xlu0 %448 }
 0x149   : > { %2372 = vrsqrt.f32 %v488_v32  ;;  %v474_v40 = vmul.f32 0.015625, %v446_v38  ;;  %v475_v41 = vmul.f32 0.015625, %v449_v39  ;;  %v535_v43 = vmul.f32 %v2728_v34, %v513_v20 }
 0x14a   : > { %v2361_v42 = vpop.eup %2360  ;;  %2374 = vrsqrt.f32 %v489_v33 }
 0x14b   : > { %v2363_v46 = vpop.eup %2362  ;;  %v490_v24 = vadd.f32 1e-06, %v474_v40  ;;  %v491_v48 = vadd.f32 1e-06, %v475_v41  ;;  %v514_v50 = vmul.f32 %v2361_v42, %v2631_v44  ;;  %v557_v57 = vadd.f32 %v2735_v49, %v535_v43 }
 0x14c   : > { %v452_v36 = vpop.xlane.xlu1 %451  ;;  %v455_v51 = vpop.xlane.xlu0 %454  ;;  %v515_v52 = vmul.f32 %v2363_v46, %v2625_v37 }
 0x14d   : > { %2376 = vrsqrt.f32 %v490_v24  ;;  %v476_v28 = vmul.f32 0.015625, %v452_v36  ;;  %v477_v29 = vmul.f32 0.015625, %v455_v51  ;;  %v536_v53 = vmul.f32 %v2728_v34, %v514_v50 }
 0x14e   : > { %v2365_v56 = vpop.eup %2364  ;;  %2378 = vrsqrt.f32 %v491_v48  ;;  %v537_v37 = vmul.f32 %v2728_v34, %v515_v52 }
 0x14f   : > { %v2367_v58 = vpop.eup %2366  ;;  %v492_v59 = vadd.f32 1e-06, %v476_v28  ;;  %v493_v60 = vadd.f32 1e-06, %v477_v29  ;;  %v558_v61 = vadd.f32 %v2735_v49, %v536_v53  ;;  %v516_v44 = vmul.f32 %v2365_v56, %v2633_v45 }
 0x150   : > { %v458_v62 = vpop.xlane.xlu1 %457  ;;  %v461_v63 = vpop.xlane.xlu0 %460  ;;  %v517_v2 = vmul.f32 %v2367_v58, %v2641_v54  ;;  %v559_v54 = vadd.f32 %v2735_v49, %v537_v37 }
 0x151   : > { %2380 = vrsqrt.f32 %v492_v59  ;;  %v478_v3 = vmul.f32 0.015625, %v458_v62  ;;  %v479_v4 = vmul.f32 0.015625, %v461_v63  ;;  %v573_v5 = vpack.c.bf16 %v558_v61, %v557_v57 }
 0x152   : > { %v2369_v6 = vpop.eup %2368  ;;  %2382 = vrsqrt.f32 %v493_v60  ;;  %v538_v7 = vmul.f32 %v2728_v34, %v516_v44  ;;  %v539_v8 = vmul.f32 %v2728_v34, %v517_v2 }
 0x153   : > { %v2371_v9 = vpop.eup %2370  ;;  %v494_v12 = vadd.f32 1e-06, %v478_v3  ;;  %v495_v13 = vadd.f32 1e-06, %v479_v4  ;;  %2237 = vmatprep.mubr.msk.bf16.mxu0 %vm319_vm0, %v573_v5  ;;  %v518_v45 = vmul.f32 %v2369_v6, %v2643_v55 }
 0x154   : > { %v464_v14 = vpop.xlane.xlu1 %463  ;;  %v560_v15 = vadd.f32 %v2735_v49, %v538_v7  ;;  %v519_v18 = vmul.f32 %v2371_v9, %v2652_v0  ;;  %v561_v27 = vadd.f32 %v2735_v49, %v539_v8 }
 0x155   : > { %2384 = vrsqrt.f32 %v494_v12  ;;  %v480_v19 = vmul.f32 0.015625, %v464_v14  ;;  %v540_v22 = vmul.f32 %v2728_v34, %v518_v45 }
 0x156   : > { %v2373_v16 = vpop.eup %2372  ;;  %2386 = vrsqrt.f32 %v495_v13  ;;  %v574_v26 = vpack.c.bf16 %v560_v15, %v559_v54  ;;  %v541_v33 = vmul.f32 %v2728_v34, %v519_v18 }
 0x157   : > { %v2375_v30 = vpop.eup %2374  ;;  %v496_v31 = vadd.f32 1e-06, %v480_v19  ;;  %v562_v55 = vadd.f32 %v2735_v49, %v540_v22  ;;  %v520_v32 = vmul.f32 %v2373_v16, %v2655_v1 }
 0x158   : > { %2238 = vmatmul.mubr.msk.bf16.vlgmr.msra.gmra.mxu0 %vm319_vm0, %v574_v26  ;;  %v521_v0 = vmul.f32 %v2375_v30, %v2664_v10  ;;  %v563_v41 = vadd.f32 %v2735_v49, %v541_v33 }
 0x159   : > { %2388 = vrsqrt.f32 %v496_v31  ;;  %v575_v20 = vpack.c.bf16 %v562_v55, %v561_v27  ;;  %v542_v38 = vmul.f32 %v2728_v34, %v520_v32 }
 0x15a   : > { %v2377_v39 = vpop.eup %2376  ;;  %v543_v43 = vmul.f32 %v2728_v34, %v521_v0 }
 0x15b   : > { %v2379_v40 = vpop.eup %2378  ;;  %2241 = vmatprep.mubr.msk.bf16.mxu0 %vm319_vm0, %v575_v20  ;;  %v564_v42 = vadd.f32 %v2735_v49, %v542_v38  ;;  %v522_v1 = vmul.f32 %v2377_v39, %v2667_v11 }
 0x15c   : > { %v523_v46 = vmul.f32 %v2379_v40, %v2676_v23  ;;  %v565_v36 = vadd.f32 %v2735_v49, %v543_v43 }
 0x15d   : > { %v576_v24 = vpack.c.bf16 %v564_v42, %v563_v41  ;;  %v544_v10 = vmul.f32 %v2728_v34, %v522_v1 }
 0x15e   : > { %v2381_v48 = vpop.eup %2380  ;;  %v545_v28 = vmul.f32 %v2728_v34, %v523_v46 }
 0x15f   : > { %v2383_v50 = vpop.eup %2382  ;;  %v566_v51 = vadd.f32 %v2735_v49, %v544_v10  ;;  %v524_v52 = vmul.f32 %v2381_v48, %v2679_v17 }
 0x160   : > { %2242 = vmatmul.mubr.msk.bf16.gmra.mxu0 %vm319_vm0, %v576_v24  ;;  %v525_v11 = vmul.f32 %v2383_v50, %v2688_v35  ;;  %v567_v57 = vadd.f32 %v2735_v49, %v545_v28 }
 0x161   : > { %v577_v29 = vpack.c.bf16 %v566_v51, %v565_v36  ;;  %v546_v23 = vmul.f32 %v2728_v34, %v524_v52 }
 0x162   : > { %v2385_v53 = vpop.eup %2384  ;;  %v547_v17 = vmul.f32 %v2728_v34, %v525_v11 }
 0x163   : > { %v2387_v56 = vpop.eup %2386  ;;  %2245 = vmatprep.mubr.msk.bf16.mxu1 %vm319_vm0, %v577_v29  ;;  %v568_v58 = vadd.f32 %v2735_v49, %v546_v23  ;;  %v526_v59 = vmul.f32 %v2385_v53, %v2691_v21 }
 0x164   : > { %v527_v60 = vmul.f32 %v2387_v56, %v2700_v47  ;;  %v569_v62 = vadd.f32 %v2735_v49, %v547_v17 }
 0x165   : > { %v578_v61 = vpack.c.bf16 %v568_v58, %v567_v57  ;;  %v548_v35 = vmul.f32 %v2728_v34, %v526_v59 }
 0x166   : > { %v2389_v44 = vpop.eup %2388  ;;  %v549_v2 = vmul.f32 %v2728_v34, %v527_v60 }
 0x167   : > { %2246 = vmatmul.mubr.msk.bf16.vlgmr.msra.gmra.mxu1 %vm319_vm0, %v578_v61  ;;  %v570_v63 = vadd.f32 %v2735_v49, %v548_v35  ;;  %v528_v37 = vmul.f32 %v2389_v44, %v2703_v25  ;;  %v2795_v25 = vld [vmem:[%s3858_s4] ss:$0 sm:$0xff] }
 0x168   : > { %v571_v47 = vadd.f32 %v2735_v49, %v549_v2 }
 0x169   : > { %v579_v21 = vpack.c.bf16 %v570_v63, %v569_v62  ;;  %v550_v3 = vmul.f32 %v2728_v34, %v528_v37 }
 0x16b   : > { %2249 = vmatprep.mubr.msk.bf16.mxu1 %vm319_vm0, %v579_v21  ;;  %v572_v4 = vadd.f32 %v2735_v49, %v550_v3 }
 0x16d   : > { %v580_v5 = vpack.c.bf16 %v572_v4, %v571_v47 }
 0x16f   : > { %2250 = vmatmul.mubr.msk.bf16.gmra.mxu1 %vm319_vm0, %v580_v5 }
 0x218   : > { %v2239_v6 = vpop.f32.mrf.mxu0 }
 0x219   : > { %v2798_v34 = vadd.f32 %v2239_v6, %v2795_v25 }
 0x21a   : > { %v678_v49 = vpop.f32.mrf.mxu0 }
 0x21b   : > { %v2807_v7 = vpack.c.bf16 %v2798_v34, %v2798_v34  ;;  %v2810_v8 = vadd.f32 %v2795_v25, %v678_v49 }
 0x21c   : > { %v2240_v9 = vpop.f32.mrf.mxu0 }
 0x21d   : > { %808 = vst.msk [vmem:[%s2803_s22 + $0x8] sm:$0xf] %vm805_vm1, %v2807_v7  ;;  %v2817_v12 = vpack.c.bf16 %v2810_v8, %v2810_v8  ;;  %v2820_v13 = vadd.f32 %v2240_v9, %v2795_v25  ;;  %826 = vrot.lane.b32.xlu1 %v2807_v7, %s3868_s23 }
 0x21e   : > { %v681_v45 = vpop.f32.mrf.mxu0 }
 0x21f   : > { %806 = vst.msk [vmem:[%s2803_s22] sm:$0xf] %vm805_vm1, %v2817_v12  ;;  %v2829_v14 = vpack.c.bf16 %v2820_v13, %v2820_v13  ;;  %v2832_v54 = vadd.f32 %v2795_v25, %v681_v45  ;;  %v2314_v62 = vpack.i.bf16 %v2820_v13, %v2798_v34 }
 0x220   : > { %v2243_v15 = vpop.f32.mrf.mxu0 }
 0x221   : > { %809 = vst.msk [vmem:[%s2803_s22 + $0xc] sm:$0xf] %vm805_vm1, %v2829_v14  ;;  %v2839_v18 = vpack.c.bf16 %v2832_v54, %v2832_v54  ;;  %v2324_v19 = vpack.i.bf16 %v2832_v54, %v2810_v8  ;;  %v2844_v22 = vadd.f32 %v2243_v15, %v2795_v25  ;;  %1390 = vrot.lane.b32.xlu1 %v2807_v7, %s2453_s29 }
 0x222   : > { %v694_v16 = vpop.f32.mrf.mxu0 }
 0x223   : > { %807 = vst.msk [vmem:[%s2803_s22 + $0x4] sm:$0xf] %vm805_vm1, %v2839_v18  ;;  %v2853_v26 = vpack.c.bf16 %v2844_v22, %v2844_v22  ;;  %v2856_v27 = vadd.f32 %v2795_v25, %v694_v16 }
 0x224   : > { %v2244_v30 = vpop.f32.mrf.mxu0 }
 0x225   : > { %812 = vst.msk [vmem:[%s2803_s22 + $0x18] sm:$0xf] %vm805_vm1, %v2853_v26  ;;  %v2863_v31 = vpack.c.bf16 %v2856_v27, %v2856_v27  ;;  %v2866_v55 = vadd.f32 %v2244_v30, %v2795_v25 }
 0x226   : > { %v697_v32 = vpop.f32.mrf.mxu0 }
 0x227   : > { %810 = vst.msk [vmem:[%s2803_s22 + $0x10] sm:$0xf] %vm805_vm1, %v2863_v31  ;;  %v2334_v33 = vpack.i.bf16 %v2866_v55, %v2844_v22  ;;  %v2875_v0 = vpack.c.bf16 %v2866_v55, %v2866_v55  ;;  %v2878_v20 = vadd.f32 %v2795_v25, %v697_v32  ;;  %v2247_v38 = vpop.f32.mrf.mxu1 }
 0x228   : > { %v2881_v39 = vadd.f32 %v2247_v38, %v2795_v25 }
 0x229   : > { %813 = vst.msk [vmem:[%s2803_s22 + $0x1c] sm:$0xf] %vm805_vm1, %v2875_v0  ;;  %v2888_v40 = vpack.c.bf16 %v2878_v20, %v2878_v20  ;;  %v2344_v41 = vpack.i.bf16 %v2878_v20, %v2856_v27  ;;  %v710_v42 = vpop.f32.mrf.mxu1 }
 0x22a   : > { %v2894_v1 = vpack.c.bf16 %v2881_v39, %v2881_v39  ;;  %v2897_v43 = vadd.f32 %v2795_v25, %v710_v42 }
 0x22b   : > { %811 = vst.msk [vmem:[%s2803_s22 + $0x14] sm:$0xf] %vm805_vm1, %v2888_v40  ;;  %v2248_v46 = vpop.f32.mrf.mxu1 }
 0x22c   : > { %816 = vst.msk [vmem:[%s2803_s22 + $0x28] sm:$0xf] %vm805_vm1, %v2894_v1  ;;  %v2907_v24 = vpack.c.bf16 %v2897_v43, %v2897_v43  ;;  %v722_v10 = vadd.f32 %v2248_v46, %v2795_v25  ;;  %1406 = vrot.lane.b32.xlu1 %v2894_v1, %s2453_s29  ;;  %842 = vrot.lane.b32.xlu0 %v2894_v1, %s3868_s23 }
 0x22d   : > { %v713_v48 = vpop.f32.mrf.mxu1 }
 0x22e   : > { %814 = vst.msk [vmem:[%s2803_s22 + $0x20] sm:$0xf] %vm805_vm1, %v2907_v24  ;;  %v2917_v50 = vpack.c.bf16 %v722_v10, %v722_v10  ;;  %v2920_v36 = vadd.f32 %v2795_v25, %v713_v48  ;;  %v2319_v63 = vpack.i.bf16 %v722_v10, %v2881_v39 }
 0x22f   : > { %v2251_v51 = vpop.f32.mrf.mxu1 }
 0x230   : > { %817 = vst.msk [vmem:[%s2803_s22 + $0x2c] sm:$0xf] %vm805_vm1, %v2917_v50  ;;  %v2927_v52 = vpack.c.bf16 %v2920_v36, %v2920_v36  ;;  %v2329_v28 = vpack.i.bf16 %v2920_v36, %v2897_v43  ;;  %v2932_v11 = vadd.f32 %v2251_v51, %v2795_v25  ;;  %1454 = vrot.lane.b32.xlu1 %v2807_v7, %s3870_s8 }
 0x231   : > { %890 = vrot.lane.b32.xlu0 %v2807_v7, %s3862_s9  ;;  %v726_v29 = vpop.f32.mrf.mxu1 }
 0x232   : > { %815 = vst.msk [vmem:[%s2803_s22 + $0x24] sm:$0xf] %vm805_vm1, %v2927_v52  ;;  %v2943_v23 = vpack.c.bf16 %v2932_v11, %v2932_v11  ;;  %v2946_v53 = vadd.f32 %v2795_v25, %v726_v29 }
 0x233   : > { %v2252_v56 = vpop.f32.mrf.mxu1 }
 0x234   : > { %820 = vst.msk [vmem:[%s2803_s22 + $0x38] sm:$0xf] %vm805_vm1, %v2943_v23  ;;  %v2953_v57 = vpack.c.bf16 %v2946_v53, %v2946_v53  ;;  %v2956_v58 = vadd.f32 %v2252_v56, %v2795_v25  ;;  %1470 = vrot.lane.b32.xlu1 %v2894_v1, %s3870_s8 }
 0x235   : > { %906 = vrot.lane.b32.xlu0 %v2894_v1, %s3862_s9  ;;  %v729_v59 = vpop.f32.mrf.mxu1 }
 0x236   : > { %818 = vst.msk [vmem:[%s2803_s22 + $0x30] sm:$0xf] %vm805_vm1, %v2953_v57  ;;  %v2339_v17 = vpack.i.bf16 %v2956_v58, %v2932_v11  ;;  %v2969_v60 = vpack.c.bf16 %v2956_v58, %v2956_v58  ;;  %v2972_v61 = vadd.f32 %v2795_v25, %v729_v59 }
 0x238   : > { %821 = vst.msk [vmem:[%s2803_s22 + $0x3c] sm:$0xf] %vm805_vm1, %v2969_v60  ;;  %v2979_v35 = vpack.c.bf16 %v2972_v61, %v2972_v61  ;;  %v2349_v44 = vpack.i.bf16 %v2972_v61, %v2946_v53  ;;  %1519 = vrot.lane.b32.xlu1 %v2807_v7, %s2456_s13 }
 0x239   : > { %954 = vrot.lane.b32.xlu0 %v2807_v7, %s3864_s14 }
 0x23a   : > { %819 = vst.msk [vmem:[%s2803_s22 + $0x34] sm:$0xf] %vm805_vm1, %v2979_v35 }
 0x23c   : > { %1535 = vrot.lane.b32.xlu1 %v2894_v1, %s2456_s13 }
 0x23d   : > { %970 = vrot.lane.b32.xlu0 %v2894_v1, %s3864_s14 }
 0x240   : > { %1584 = vrot.lane.b32.xlu1 %v2807_v7, %s2458_s15 }
 0x241   : > { %1018 = vrot.lane.b32.xlu0 %v2807_v7, %s2459_s16 }
 0x244   : > { %1600 = vrot.lane.b32.xlu1 %v2894_v1, %s2458_s15 }
 0x245   : > { %1034 = vrot.lane.b32.xlu0 %v2894_v1, %s2459_s16 }
 0x248   : > { %2315 = vrot.lane.b32.xlu1 %v2314_v62, %s3866_s17 }
 0x249   : > { %1082 = vrot.lane.b32.xlu0 %v2807_v7, %s2461_s18 }
 0x24c   : > { %2320 = vrot.lane.b32.xlu1 %v2319_v63, %s3866_s17 }
 0x24d   : > { %1098 = vrot.lane.b32.xlu0 %v2894_v1, %s2461_s18 }
 0x250   : > { %1386 = vrot.lane.b32.xlu1 %v2817_v12, %s2453_s29 }
 0x251   : > { %1146 = vrot.lane.b32.xlu0 %v2807_v7, %s2462_s19 }
 0x254   : > { %1402 = vrot.lane.b32.xlu1 %v2907_v24, %s2453_s29 }
 0x255   : > { %1162 = vrot.lane.b32.xlu0 %v2894_v1, %s2462_s19 }
 0x258   : > { %1450 = vrot.lane.b32.xlu1 %v2817_v12, %s3870_s8 }
 0x259   : > { %1210 = vrot.lane.b32.xlu0 %v2807_v7, %s2463_s20 }
 0x25c   : > { %1466 = vrot.lane.b32.xlu1 %v2907_v24, %s3870_s8 }
 0x25d   : > { %1226 = vrot.lane.b32.xlu0 %v2894_v1, %s2463_s20 }
 0x260   : > { %1515 = vrot.lane.b32.xlu1 %v2817_v12, %s2456_s13 }
 0x261   : > { %822 = vrot.lane.b32.xlu0 %v2817_v12, %s3868_s23 }
 0x264   : > { %1531 = vrot.lane.b32.xlu1 %v2907_v24, %s2456_s13 }
 0x265   : > { %838 = vrot.lane.b32.xlu0 %v2907_v24, %s3868_s23 }
 0x268   : > { %1580 = vrot.lane.b32.xlu1 %v2817_v12, %s2458_s15 }
 0x269   : > { %886 = vrot.lane.b32.xlu0 %v2817_v12, %s3862_s9 }
 0x26c   : > { %1596 = vrot.lane.b32.xlu1 %v2907_v24, %s2458_s15 }
 0x26d   : > { %902 = vrot.lane.b32.xlu0 %v2907_v24, %s3862_s9 }
 0x270   : > { %828 = vrot.lane.b32.xlu1 %v2829_v14, %s3868_s23 }
 0x271   : > { %950 = vrot.lane.b32.xlu0 %v2817_v12, %s3864_s14 }
 0x274   : > { %844 = vrot.lane.b32.xlu1 %v2917_v50, %s3868_s23 }
 0x275   : > { %966 = vrot.lane.b32.xlu0 %v2907_v24, %s3864_s14 }
 0x278   : > { %892 = vrot.lane.b32.xlu1 %v2829_v14, %s3862_s9 }
 0x279   : > { %1014 = vrot.lane.b32.xlu0 %v2817_v12, %s2459_s16 }
 0x27c   : > { %908 = vrot.lane.b32.xlu1 %v2917_v50, %s3862_s9  ;;  %s2090_s9 = sshll.u32 %s3072_s21, 8 }
 0x27d   : > { %1030 = vrot.lane.b32.xlu0 %v2907_v24, %s2459_s16 }
 0x280   : > { %956 = vrot.lane.b32.xlu1 %v2829_v14, %s3864_s14 }
 0x281   : > { %1078 = vrot.lane.b32.xlu0 %v2817_v12, %s2461_s18 }
 0x284   : > { %972 = vrot.lane.b32.xlu1 %v2917_v50, %s3864_s14  ;;  %s3085_s14 = scalar_lea.vmem [#allocation4], %s2090_s9  ;;  %s3877_s9 = smov 112  }
 0x285   : > { %1094 = vrot.lane.b32.xlu0 %v2907_v24, %s2461_s18 }
 0x288   : > { %1020 = vrot.lane.b32.xlu1 %v2829_v14, %s2459_s16 }
 0x289   : > { %1142 = vrot.lane.b32.xlu0 %v2817_v12, %s2462_s19 }
 0x28c   : > { %1036 = vrot.lane.b32.xlu1 %v2917_v50, %s2459_s16 }
 0x28d   : > { %1158 = vrot.lane.b32.xlu0 %v2907_v24, %s2462_s19 }
 0x28f   : > { %v827_v37 = vpop.permute.xlu1 %826 }
 0x290   : > { %872 = vst.msk [vmem:[%s2803_s22 + $0x48] sm:$0xf] %vm805_vm1, %v827_v37  ;;  %1084 = vrot.lane.b32.xlu1 %v2829_v14, %s2461_s18 }
 0x291   : > { %1206 = vrot.lane.b32.xlu0 %v2817_v12, %s2463_s20 }
 0x293   : > { %v1391_v2 = vpop.permute.xlu1 %1390 }
 0x294   : > { %1436 = vst.msk [vmem:[%s3085_s14 + $0x8] sm:$0xf] %vm805_vm1, %v1391_v2  ;;  %1100 = vrot.lane.b32.xlu1 %v2917_v50, %s2461_s18 }
 0x295   : > { %1222 = vrot.lane.b32.xlu0 %v2907_v24, %s2463_s20 }
 0x298   : > { %1148 = vrot.lane.b32.xlu1 %v2829_v14, %s2462_s19 }
 0x299   : > { %2325 = vrot.lane.b32.xlu0 %v2324_v19, %s3866_s17 }
 0x29c   : > { %1164 = vrot.lane.b32.xlu1 %v2917_v50, %s2462_s19 }
 0x29d   : > { %2330 = vrot.lane.b32.xlu0 %v2329_v28, %s3866_s17  ;;  %s3878_s17 = smov 104  }
 0x29e   : > { %v1407_v21 = vpop.permute.xlu1 %1406  ;;  %v843_v3 = vpop.permute.xlu0 %842 }
 0x29f   : > { %1444 = vst.msk [vmem:[%s3085_s14 + $0x28] sm:$0xf] %vm805_vm1, %v1407_v21  ;;  %880 = vst.msk [vmem:[%s2803_s22 + $0x68] sm:$0xf] %vm805_vm1, %v843_v3 }
 0x2a0   : > { %1212 = vrot.lane.b32.xlu1 %v2829_v14, %s2463_s20 }
 0x2a1   : > { %1521 = vrot.lane.b32.xlu0 %v2829_v14, %s2456_s13 }
 0x2a2   : > { %v1455_v47 = vpop.permute.xlu1 %1454 }
 0x2a3   : > { %v891_v4 = vpop.permute.xlu0 %890  ;;  %2132 = vst.msk [vmem:[%s3085_s14 + $0x48] sm:$0xf] %vm805_vm1, %v1455_v47 }
 0x2a4   : > { %936 = vst.msk [vmem:[%s2803_s22 + $0x88] sm:$0xf] %vm805_vm1, %v891_v4  ;;  %1228 = vrot.lane.b32.xlu1 %v2917_v50, %s2463_s20 }
 0x2a5   : > { %1537 = vrot.lane.b32.xlu0 %v2917_v50, %s2456_s13 }
 0x2a6   : > { %v1471_v5 = vpop.permute.xlu1 %1470 }
 0x2a7   : > { %v907_v25 = vpop.permute.xlu0 %906  ;;  %2140 = vst.msk [vmem:[%s3085_s14 + $0x68] sm:$0xf] %vm805_vm1, %v1471_v5 }
 0x2a8   : > { %944 = vst.msk [vmem:[%s2803_s22 + $0xa8] sm:$0xf] %vm805_vm1, %v907_v25  ;;  %1392 = vrot.lane.b32.xlu1 %v2829_v14, %s2453_s29 }
 0x2a9   : > { %1586 = vrot.lane.b32.xlu0 %v2829_v14, %s2458_s15 }
 0x2aa   : > { %v1520_v6 = vpop.permute.xlu1 %1519 }
 0x2ab   : > { %v955_v34 = vpop.permute.xlu0 %954  ;;  %2148 = vst.msk [vmem:[%s3085_s14 + $0x88] sm:$0xf] %vm805_vm1, %v1520_v6 }
 0x2ac   : > { %1000 = vst.msk [vmem:[%s2803_s22 + $0xc8] sm:$0xf] %vm805_vm1, %v955_v34  ;;  %1408 = vrot.lane.b32.xlu1 %v2917_v50, %s2453_s29 }
 0x2ad   : > { %1602 = vrot.lane.b32.xlu0 %v2917_v50, %s2458_s15 }
 0x2ae   : > { %v1536_v49 = vpop.permute.xlu1 %1535 }
 0x2af   : > { %v971_v7 = vpop.permute.xlu0 %970  ;;  %2156 = vst.msk [vmem:[%s3085_s14 + $0xa8] sm:$0xf] %vm805_vm1, %v1536_v49 }
 0x2b0   : > { %1008 = vst.msk [vmem:[%s2803_s22 + $0xe8] sm:$0xf] %vm805_vm1, %v971_v7  ;;  %1456 = vrot.lane.b32.xlu1 %v2829_v14, %s3870_s8 }
 0x2b1   : > { %1517 = vrot.lane.b32.xlu0 %v2839_v18, %s2456_s13 }
 0x2b2   : > { %v1585_v8 = vpop.permute.xlu1 %1584 }
 0x2b3   : > { %v1019_v9 = vpop.permute.xlu0 %1018  ;;  %2164 = vst.msk [vmem:[%s3085_s14 + $0xc8] sm:$0xf] %vm805_vm1, %v1585_v8 }
 0x2b4   : > { %1064 = vst.msk [vmem:[%s2803_s22 + $0x108] sm:$0xf] %vm805_vm1, %v1019_v9  ;;  %1472 = vrot.lane.b32.xlu1 %v2917_v50, %s3870_s8 }
 0x2b5   : > { %1533 = vrot.lane.b32.xlu0 %v2927_v52, %s2456_s13 }
 0x2b6   : > { %v1601_v12 = vpop.permute.xlu1 %1600 }
 0x2b7   : > { %v1035_v13 = vpop.permute.xlu0 %1034  ;;  %2172 = vst.msk [vmem:[%s3085_s14 + $0xe8] sm:$0xf] %vm805_vm1, %v1601_v12 }
 0x2b8   : > { %1072 = vst.msk [vmem:[%s2803_s22 + $0x128] sm:$0xf] %vm805_vm1, %v1035_v13  ;;  %824 = vrot.lane.b32.xlu1 %v2839_v18, %s3868_s23 }
 0x2b9   : > { %1582 = vrot.lane.b32.xlu0 %v2839_v18, %s2458_s15 }
 0x2ba   : > { %v3161_v45 = vpop.permute.xlu1 %2315 }
 0x2bb   : > { %v1083_v14 = vpop.permute.xlu0 %1082 }
 0x2bc   : > { %1128 = vst.msk [vmem:[%s2803_s22 + $0x148] sm:$0xf] %vm805_vm1, %v1083_v14  ;;  %840 = vrot.lane.b32.xlu1 %v2927_v52, %s3868_s23 }
 0x2bd   : > { %1598 = vrot.lane.b32.xlu0 %v2927_v52, %s2458_s15 }
 0x2be   : > { %v3169_v54 = vpop.permute.xlu1 %2320 }
 0x2bf   : > { %v1099_v15 = vpop.permute.xlu0 %1098 }
 0x2c0   : > { %1136 = vst.msk [vmem:[%s2803_s22 + $0x168] sm:$0xf] %vm805_vm1, %v1099_v15  ;;  %888 = vrot.lane.b32.xlu1 %v2839_v18, %s3877_s9 }
 0x2c1   : > { %834 = vrot.lane.b32.xlu0 %v2853_v26, %s3868_s23 }
 0x2c2   : > { %v1387_v19 = vpop.permute.xlu1 %1386 }
 0x2c3   : > { %v1147_v16 = vpop.permute.xlu0 %1146  ;;  %1434 = vst.msk [vmem:[%s3085_s14] sm:$0xf] %vm805_vm1, %v1387_v19 }
 0x2c4   : > { %1192 = vst.msk [vmem:[%s2803_s22 + $0x188] sm:$0xf] %vm805_vm1, %v1147_v16  ;;  %904 = vrot.lane.b32.xlu1 %v2927_v52, %s3877_s9 }
 0x2c5   : > { %850 = vrot.lane.b32.xlu0 %v2943_v23, %s3868_s23 }
 0x2c6   : > { %v1403_v30 = vpop.permute.xlu1 %1402 }
 0x2c7   : > { %v1163_v32 = vpop.permute.xlu0 %1162  ;;  %1442 = vst.msk [vmem:[%s3085_s14 + $0x20] sm:$0xf] %vm805_vm1, %v1403_v30 }
 0x2c8   : > { %1200 = vst.msk [vmem:[%s2803_s22 + $0x1a8] sm:$0xf] %vm805_vm1, %v1163_v32  ;;  %952 = vrot.lane.b32.xlu1 %v2839_v18, %s3878_s17 }
 0x2c9   : > { %898 = vrot.lane.b32.xlu0 %v2853_v26, %s3877_s9 }
 0x2ca   : > { %v1451_v38 = vpop.permute.xlu1 %1450 }
 0x2cb   : > { %v1211_v39 = vpop.permute.xlu0 %1210  ;;  %2130 = vst.msk [vmem:[%s3085_s14 + $0x40] sm:$0xf] %vm805_vm1, %v1451_v38 }
 0x2cc   : > { %1256 = vst.msk [vmem:[%s2803_s22 + $0x1c8] sm:$0xf] %vm805_vm1, %v1211_v39  ;;  %968 = vrot.lane.b32.xlu1 %v2927_v52, %s3878_s17 }
 0x2cd   : > { %914 = vrot.lane.b32.xlu0 %v2943_v23, %s3877_s9 }
 0x2ce   : > { %v1467_v42 = vpop.permute.xlu1 %1466 }
 0x2cf   : > { %v1227_v1 = vpop.permute.xlu0 %1226  ;;  %2138 = vst.msk [vmem:[%s3085_s14 + $0x60] sm:$0xf] %vm805_vm1, %v1467_v42 }
 0x2d0   : > { %1264 = vst.msk [vmem:[%s2803_s22 + $0x1e8] sm:$0xf] %vm805_vm1, %v1227_v1  ;;  %1016 = vrot.lane.b32.xlu1 %v2839_v18, %s2459_s16 }
 0x2d1   : > { %962 = vrot.lane.b32.xlu0 %v2853_v26, %s3878_s17 }
 0x2d2   : > { %v1516_v43 = vpop.permute.xlu1 %1515 }
 0x2d3   : > { %v823_v46 = vpop.permute.xlu0 %822  ;;  %2146 = vst.msk [vmem:[%s3085_s14 + $0x80] sm:$0xf] %vm805_vm1, %v1516_v43 }
 0x2d4   : > { %870 = vst.msk [vmem:[%s2803_s22 + $0x40] sm:$0xf] %vm805_vm1, %v823_v46  ;;  %1032 = vrot.lane.b32.xlu1 %v2927_v52, %s2459_s16 }
 0x2d5   : > { %978 = vrot.lane.b32.xlu0 %v2943_v23, %s3878_s17 }
 0x2d6   : > { %v1532_v24 = vpop.permute.xlu1 %1531 }
 0x2d7   : > { %v839_v10 = vpop.permute.xlu0 %838  ;;  %2154 = vst.msk [vmem:[%s3085_s14 + $0xa0] sm:$0xf] %vm805_vm1, %v1532_v24 }
 0x2d8   : > { %878 = vst.msk [vmem:[%s2803_s22 + $0x60] sm:$0xf] %vm805_vm1, %v839_v10  ;;  %1080 = vrot.lane.b32.xlu1 %v2839_v18, %s2461_s18 }
 0x2d9   : > { %1026 = vrot.lane.b32.xlu0 %v2853_v26, %s2459_s16 }
 0x2da   : > { %v1581_v48 = vpop.permute.xlu1 %1580 }
 0x2db   : > { %v887_v50 = vpop.permute.xlu0 %886  ;;  %2162 = vst.msk [vmem:[%s3085_s14 + $0xc0] sm:$0xf] %vm805_vm1, %v1581_v48 }
 0x2dc   : > { %934 = vst.msk [vmem:[%s2803_s22 + $0x80] sm:$0xf] %vm805_vm1, %v887_v50  ;;  %1096 = vrot.lane.b32.xlu1 %v2927_v52, %s2461_s18 }
 0x2dd   : > { %1042 = vrot.lane.b32.xlu0 %v2943_v23, %s2459_s16 }
 0x2de   : > { %v1597_v36 = vpop.permute.xlu1 %1596 }
 0x2df   : > { %v903_v51 = vpop.permute.xlu0 %902  ;;  %2170 = vst.msk [vmem:[%s3085_s14 + $0xe0] sm:$0xf] %vm805_vm1, %v1597_v36 }
 0x2e0   : > { %942 = vst.msk [vmem:[%s2803_s22 + $0xa0] sm:$0xf] %vm805_vm1, %v903_v51  ;;  %1144 = vrot.lane.b32.xlu1 %v2839_v18, %s2462_s19 }
 0x2e1   : > { %1090 = vrot.lane.b32.xlu0 %v2853_v26, %s2461_s18 }
 0x2e2   : > { %v829_v28 = vpop.permute.xlu1 %828 }
 0x2e3   : > { %v951_v29 = vpop.permute.xlu0 %950  ;;  %873 = vst.msk [vmem:[%s2803_s22 + $0x4c] sm:$0xf] %vm805_vm1, %v829_v28 }
 0x2e4   : > { %998 = vst.msk [vmem:[%s2803_s22 + $0xc0] sm:$0xf] %vm805_vm1, %v951_v29  ;;  %1160 = vrot.lane.b32.xlu1 %v2927_v52, %s2462_s19 }
 0x2e5   : > { %1106 = vrot.lane.b32.xlu0 %v2943_v23, %s2461_s18 }
 0x2e6   : > { %v845_v56 = vpop.permute.xlu1 %844 }
 0x2e7   : > { %v967_v59 = vpop.permute.xlu0 %966  ;;  %881 = vst.msk [vmem:[%s2803_s22 + $0x6c] sm:$0xf] %vm805_vm1, %v845_v56 }
 0x2e8   : > { %1006 = vst.msk [vmem:[%s2803_s22 + $0xe0] sm:$0xf] %vm805_vm1, %v967_v59  ;;  %1208 = vrot.lane.b32.xlu1 %v2839_v18, %s2463_s20 }
 0x2e9   : > { %1154 = vrot.lane.b32.xlu0 %v2853_v26, %s2462_s19 }
 0x2ea   : > { %v893_v62 = vpop.permute.xlu1 %892 }
 0x2eb   : > { %v1015_v63 = vpop.permute.xlu0 %1014  ;;  %937 = vst.msk [vmem:[%s2803_s22 + $0x8c] sm:$0xf] %vm805_vm1, %v893_v62 }
 0x2ec   : > { %1062 = vst.msk [vmem:[%s2803_s22 + $0x100] sm:$0xf] %vm805_vm1, %v1015_v63  ;;  %1224 = vrot.lane.b32.xlu1 %v2927_v52, %s2463_s20 }
 0x2ed   : > { %1170 = vrot.lane.b32.xlu0 %v2943_v23, %s2462_s19 }
 0x2ee   : > { %v909_v37 = vpop.permute.xlu1 %908 }
 0x2ef   : > { %v1031_v2 = vpop.permute.xlu0 %1030  ;;  %945 = vst.msk [vmem:[%s2803_s22 + $0xac] sm:$0xf] %vm805_vm1, %v909_v37 }
 0x2f0   : > { %1070 = vst.msk [vmem:[%s2803_s22 + $0x120] sm:$0xf] %vm805_vm1, %v1031_v2  ;;  %1388 = vrot.lane.b32.xlu1 %v2839_v18, %s2453_s29 }
 0x2f1   : > { %1218 = vrot.lane.b32.xlu0 %v2853_v26, %s2463_s20 }
 0x2f2   : > { %v957_v21 = vpop.permute.xlu1 %956 }
 0x2f3   : > { %v1079_v3 = vpop.permute.xlu0 %1078  ;;  %1001 = vst.msk [vmem:[%s2803_s22 + $0xcc] sm:$0xf] %vm805_vm1, %v957_v21 }
 0x2f4   : > { %1126 = vst.msk [vmem:[%s2803_s22 + $0x140] sm:$0xf] %vm805_vm1, %v1079_v3  ;;  %1404 = vrot.lane.b32.xlu1 %v2927_v52, %s2453_s29 }
 0x2f5   : > { %1234 = vrot.lane.b32.xlu0 %v2943_v23, %s2463_s20 }
 0x2f6   : > { %v973_v47 = vpop.permute.xlu1 %972 }
 0x2f7   : > { %v1095_v4 = vpop.permute.xlu0 %1094  ;;  %1009 = vst.msk [vmem:[%s2803_s22 + $0xec] sm:$0xf] %vm805_vm1, %v973_v47 }
 0x2f8   : > { %1134 = vst.msk [vmem:[%s2803_s22 + $0x160] sm:$0xf] %vm805_vm1, %v1095_v4  ;;  %1452 = vrot.lane.b32.xlu1 %v2839_v18, %s3870_s8 }
 0x2f9   : > { %1462 = vrot.lane.b32.xlu0 %v2853_v26, %s3870_s8 }
 0x2fa   : > { %v1021_v5 = vpop.permute.xlu1 %1020 }
 0x2fb   : > { %v1143_v25 = vpop.permute.xlu0 %1142  ;;  %1065 = vst.msk [vmem:[%s2803_s22 + $0x10c] sm:$0xf] %vm805_vm1, %v1021_v5 }
 0x2fc   : > { %1190 = vst.msk [vmem:[%s2803_s22 + $0x180] sm:$0xf] %vm805_vm1, %v1143_v25  ;;  %1468 = vrot.lane.b32.xlu1 %v2927_v52, %s3870_s8 }
 0x2fd   : > { %830 = vrot.lane.b32.xlu0 %v2863_v31, %s3868_s23 }
 0x2fe   : > { %v1037_v18 = vpop.permute.xlu1 %1036 }
 0x2ff   : > { %v1159_v6 = vpop.permute.xlu0 %1158  ;;  %1073 = vst.msk [vmem:[%s2803_s22 + $0x12c] sm:$0xf] %vm805_vm1, %v1037_v18 }
 0x300   : > { %1198 = vst.msk [vmem:[%s2803_s22 + $0x1a0] sm:$0xf] %vm805_vm1, %v1159_v6  ;;  %1398 = vrot.lane.b32.xlu1 %v2853_v26, %s2453_s29 }
 0x301   : > { %846 = vrot.lane.b32.xlu0 %v2953_v57, %s3868_s23  ;;  %s3879_s23 = smov 64  }
 0x302   : > { %v1085_v34 = vpop.permute.xlu1 %1084 }
 0x303   : > { %v1207_v52 = vpop.permute.xlu0 %1206  ;;  %1129 = vst.msk [vmem:[%s2803_s22 + $0x14c] sm:$0xf] %vm805_vm1, %v1085_v34 }
 0x304   : > { %1254 = vst.msk [vmem:[%s2803_s22 + $0x1c0] sm:$0xf] %vm805_vm1, %v1207_v52  ;;  %1414 = vrot.lane.b32.xlu1 %v2943_v23, %s2453_s29 }
 0x305   : > { %894 = vrot.lane.b32.xlu0 %v2863_v31, %s3877_s9 }
 0x306   : > { %v1101_v49 = vpop.permute.xlu1 %1100 }
 0x307   : > { %v1223_v7 = vpop.permute.xlu0 %1222  ;;  %1137 = vst.msk [vmem:[%s2803_s22 + $0x16c] sm:$0xf] %vm805_vm1, %v1101_v49 }
 0x308   : > { %1262 = vst.msk [vmem:[%s2803_s22 + $0x1e0] sm:$0xf] %vm805_vm1, %v1223_v7  ;;  %1478 = vrot.lane.b32.xlu1 %v2943_v23, %s3870_s8 }
 0x309   : > { %910 = vrot.lane.b32.xlu0 %v2953_v57, %s3877_s9 }
 0x30a   : > { %v1149_v8 = vpop.permute.xlu1 %1148 }
 0x30b   : > { %v3321_v9 = vpop.permute.xlu0 %2325  ;;  %1193 = vst.msk [vmem:[%s2803_s22 + $0x18c] sm:$0xf] %vm805_vm1, %v1149_v8 }
 0x30c   : > { %1527 = vrot.lane.b32.xlu1 %v2853_v26, %s2456_s13  ;;  %v2327_v6 = vunpack.i.l.bf16 %v3321_v9  ;;  %v2328_v49 = vunpack.i.h.bf16 %v3321_v9 }
 0x30d   : > { %958 = vrot.lane.b32.xlu0 %v2863_v31, %s3878_s17 }
 0x30e   : > { %v1165_v12 = vpop.permute.xlu1 %1164 }
 0x30f   : > { %v3329_v13 = vpop.permute.xlu0 %2330  ;;  %1201 = vst.msk [vmem:[%s2803_s22 + $0x1ac] sm:$0xf] %vm805_vm1, %v1165_v12  ;;  %v2317_v12 = vunpack.i.l.bf16 %v3161_v45 }
 0x310   : > { %1543 = vrot.lane.b32.xlu1 %v2943_v23, %s2456_s13 }
 0x311   : > { %974 = vrot.lane.b32.xlu0 %v2953_v57, %s3878_s17 }
 0x312   : > { %v1213_v14 = vpop.permute.xlu1 %1212 }
 0x313   : > { %v1522_v15 = vpop.permute.xlu0 %1521  ;;  %1257 = vst.msk [vmem:[%s2803_s22 + $0x1cc] sm:$0xf] %vm805_vm1, %v1213_v14 }
 0x314   : > { %2149 = vst.msk [vmem:[%s3085_s14 + $0x8c] sm:$0xf] %vm805_vm1, %v1522_v15  ;;  %1592 = vrot.lane.b32.xlu1 %v2853_v26, %s2458_s15  ;;  %v2318_v15 = vunpack.i.h.bf16 %v3161_v45 }
 0x315   : > { %1022 = vrot.lane.b32.xlu0 %v2863_v31, %s2459_s16 }
 0x316   : > { %v1229_v19 = vpop.permute.xlu1 %1228 }
 0x317   : > { %v1538_v16 = vpop.permute.xlu0 %1537  ;;  %1265 = vst.msk [vmem:[%s2803_s22 + $0x1ec] sm:$0xf] %vm805_vm1, %v1229_v19 }
 0x318   : > { %2157 = vst.msk [vmem:[%s3085_s14 + $0xac] sm:$0xf] %vm805_vm1, %v1538_v16  ;;  %2335 = vrot.lane.b32.xlu1 %v2334_v33, %s3879_s23 }
 0x319   : > { %1038 = vrot.lane.b32.xlu0 %v2953_v57, %s2459_s16 }
 0x31a   : > { %v1393_v26 = vpop.permute.xlu1 %1392 }
 0x31b   : > { %v1587_v30 = vpop.permute.xlu0 %1586  ;;  %1437 = vst.msk [vmem:[%s3085_s14 + $0xc] sm:$0xf] %vm805_vm1, %v1393_v26 }
 0x31c   : > { %2165 = vst.msk [vmem:[%s3085_s14 + $0xcc] sm:$0xf] %vm805_vm1, %v1587_v30  ;;  %2340 = vrot.lane.b32.xlu1 %v2339_v17, %s3879_s23 }
 0x31d   : > { %1086 = vrot.lane.b32.xlu0 %v2863_v31, %s2461_s18 }
 0x31e   : > { %v1409_v22 = vpop.permute.xlu1 %1408 }
 0x31f   : > { %v1603_v55 = vpop.permute.xlu0 %1602  ;;  %1445 = vst.msk [vmem:[%s3085_s14 + $0x2c] sm:$0xf] %vm805_vm1, %v1409_v22 }
 0x320   : > { %2173 = vst.msk [vmem:[%s3085_s14 + $0xec] sm:$0xf] %vm805_vm1, %v1603_v55  ;;  %1394 = vrot.lane.b32.xlu1 %v2863_v31, %s2453_s29 }
 0x321   : > { %1102 = vrot.lane.b32.xlu0 %v2953_v57, %s2461_s18 }
 0x322   : > { %v1457_v33 = vpop.permute.xlu1 %1456 }
 0x323   : > { %v1518_v11 = vpop.permute.xlu0 %1517  ;;  %2133 = vst.msk [vmem:[%s3085_s14 + $0x4c] sm:$0xf] %vm805_vm1, %v1457_v33 }
 0x324   : > { %2147 = vst.msk [vmem:[%s3085_s14 + $0x84] sm:$0xf] %vm805_vm1, %v1518_v11  ;;  %1410 = vrot.lane.b32.xlu1 %v2953_v57, %s2453_s29 }
 0x325   : > { %1150 = vrot.lane.b32.xlu0 %v2863_v31, %s2462_s19 }
 0x326   : > { %v1473_v58 = vpop.permute.xlu1 %1472 }
 0x327   : > { %v1534_v17 = vpop.permute.xlu0 %1533  ;;  %2141 = vst.msk [vmem:[%s3085_s14 + $0x6c] sm:$0xf] %vm805_vm1, %v1473_v58 }
 0x328   : > { %2155 = vst.msk [vmem:[%s3085_s14 + $0xa4] sm:$0xf] %vm805_vm1, %v1534_v17  ;;  %1458 = vrot.lane.b32.xlu1 %v2863_v31, %s3870_s8 }
 0x329   : > { %1166 = vrot.lane.b32.xlu0 %v2953_v57, %s2462_s19 }
 0x32a   : > { %v825_v32 = vpop.permute.xlu1 %824 }
 0x32b   : > { %v1583_v38 = vpop.permute.xlu0 %1582  ;;  %871 = vst.msk [vmem:[%s2803_s22 + $0x44] sm:$0xf] %vm805_vm1, %v825_v32 }
 0x32c   : > { %2163 = vst.msk [vmem:[%s3085_s14 + $0xc4] sm:$0xf] %vm805_vm1, %v1583_v38  ;;  %1474 = vrot.lane.b32.xlu1 %v2953_v57, %s3870_s8  ;;  %s3880_s8 = smov 120  }
 0x32d   : > { %1214 = vrot.lane.b32.xlu0 %v2863_v31, %s2463_s20 }
 0x32e   : > { %v841_v39 = vpop.permute.xlu1 %840 }
 0x32f   : > { %v1599_v42 = vpop.permute.xlu0 %1598  ;;  %879 = vst.msk [vmem:[%s2803_s22 + $0x64] sm:$0xf] %vm805_vm1, %v841_v39 }
 0x330   : > { %2171 = vst.msk [vmem:[%s3085_s14 + $0xe4] sm:$0xf] %vm805_vm1, %v1599_v42  ;;  %1523 = vrot.lane.b32.xlu1 %v2863_v31, %s2456_s13 }
 0x331   : > { %1230 = vrot.lane.b32.xlu0 %v2953_v57, %s2463_s20 }
 0x332   : > { %v889_v1 = vpop.permute.xlu1 %888 }
 0x333   : > { %v835_v43 = vpop.permute.xlu0 %834  ;;  %935 = vst.msk [vmem:[%s2803_s22 + $0x84] sm:$0xf] %vm805_vm1, %v889_v1 }
 0x334   : > { %876 = vst.msk [vmem:[%s2803_s22 + $0x58] sm:$0xf] %vm805_vm1, %v835_v43  ;;  %1539 = vrot.lane.b32.xlu1 %v2953_v57, %s2456_s13 }
 0x335   : > { %2345 = vrot.lane.b32.xlu0 %v2344_v41, %s3879_s23 }
 0x336   : > { %v905_v46 = vpop.permute.xlu1 %904 }
 0x337   : > { %v851_v24 = vpop.permute.xlu0 %850  ;;  %943 = vst.msk [vmem:[%s2803_s22 + $0xa4] sm:$0xf] %vm805_vm1, %v905_v46 }
 0x338   : > { %884 = vst.msk [vmem:[%s2803_s22 + $0x78] sm:$0xf] %vm805_vm1, %v851_v24  ;;  %1588 = vrot.lane.b32.xlu1 %v2863_v31, %s2458_s15 }
 0x339   : > { %2350 = vrot.lane.b32.xlu0 %v2349_v44, %s3879_s23 }
 0x33a   : > { %v953_v27 = vpop.permute.xlu1 %952 }
 0x33b   : > { %v899_v20 = vpop.permute.xlu0 %898  ;;  %999 = vst.msk [vmem:[%s2803_s22 + $0xc4] sm:$0xf] %vm805_vm1, %v953_v27 }
 0x33c   : > { %940 = vst.msk [vmem:[%s2803_s22 + $0x98] sm:$0xf] %vm805_vm1, %v899_v20  ;;  %1604 = vrot.lane.b32.xlu1 %v2953_v57, %s2458_s15 }
 0x33d   : > { %1529 = vrot.lane.b32.xlu0 %v2875_v0, %s2456_s13 }
 0x33e   : > { %v969_v31 = vpop.permute.xlu1 %968 }
 0x33f   : > { %v915_v41 = vpop.permute.xlu0 %914  ;;  %1007 = vst.msk [vmem:[%s2803_s22 + $0xe4] sm:$0xf] %vm805_vm1, %v969_v31 }
 0x340   : > { %948 = vst.msk [vmem:[%s2803_s22 + $0xb8] sm:$0xf] %vm805_vm1, %v915_v41  ;;  %836 = vrot.lane.b32.xlu1 %v2875_v0, %s3880_s8 }
 0x341   : > { %1545 = vrot.lane.b32.xlu0 %v2969_v60, %s2456_s13 }
 0x342   : > { %v1017_v53 = vpop.permute.xlu1 %1016 }
 0x343   : > { %v963_v57 = vpop.permute.xlu0 %962  ;;  %1063 = vst.msk [vmem:[%s2803_s22 + $0x104] sm:$0xf] %vm805_vm1, %v1017_v53 }
 0x344   : > { %1004 = vst.msk [vmem:[%s2803_s22 + $0xd8] sm:$0xf] %vm805_vm1, %v963_v57  ;;  %852 = vrot.lane.b32.xlu1 %v2969_v60, %s3880_s8 }
 0x345   : > { %1594 = vrot.lane.b32.xlu0 %v2875_v0, %s2458_s15 }
 0x346   : > { %v1033_v61 = vpop.permute.xlu1 %1032 }
 0x347   : > { %v979_v44 = vpop.permute.xlu0 %978  ;;  %1071 = vst.msk [vmem:[%s2803_s22 + $0x124] sm:$0xf] %vm805_vm1, %v1033_v61 }
 0x348   : > { %1012 = vst.msk [vmem:[%s2803_s22 + $0xf8] sm:$0xf] %vm805_vm1, %v979_v44  ;;  %900 = vrot.lane.b32.xlu1 %v2875_v0, %s3877_s9 }
 0x349   : > { %1525 = vrot.lane.b32.xlu0 %v2888_v40, %s2456_s13 }
 0x34a   : > { %v1081_v10 = vpop.permute.xlu1 %1080 }
 0x34b   : > { %v1027_v48 = vpop.permute.xlu0 %1026  ;;  %1127 = vst.msk [vmem:[%s2803_s22 + $0x144] sm:$0xf] %vm805_vm1, %v1081_v10 }
 0x34c   : > { %1068 = vst.msk [vmem:[%s2803_s22 + $0x118] sm:$0xf] %vm805_vm1, %v1027_v48  ;;  %916 = vrot.lane.b32.xlu1 %v2969_v60, %s3877_s9 }
 0x34d   : > { %1541 = vrot.lane.b32.xlu0 %v2979_v35, %s2456_s13  ;;  %s3881_s13 = smov 24  }
 0x34e   : > { %v1097_v50 = vpop.permute.xlu1 %1096 }
 0x34f   : > { %v1043_v36 = vpop.permute.xlu0 %1042  ;;  %1135 = vst.msk [vmem:[%s2803_s22 + $0x164] sm:$0xf] %vm805_vm1, %v1097_v50 }
 0x350   : > { %1076 = vst.msk [vmem:[%s2803_s22 + $0x138] sm:$0xf] %vm805_vm1, %v1043_v36  ;;  %964 = vrot.lane.b32.xlu1 %v2875_v0, %s3878_s17 }
 0x351   : > { %1590 = vrot.lane.b32.xlu0 %v2888_v40, %s2458_s15 }
 0x352   : > { %v1145_v51 = vpop.permute.xlu1 %1144 }
 0x353   : > { %v1091_v28 = vpop.permute.xlu0 %1090  ;;  %1191 = vst.msk [vmem:[%s2803_s22 + $0x184] sm:$0xf] %vm805_vm1, %v1145_v51 }
 0x354   : > { %1132 = vst.msk [vmem:[%s2803_s22 + $0x158] sm:$0xf] %vm805_vm1, %v1091_v28  ;;  %980 = vrot.lane.b32.xlu1 %v2969_v60, %s3878_s17 }
 0x355   : > { %1606 = vrot.lane.b32.xlu0 %v2979_v35, %s2458_s15 }
 0x356   : > { %v1161_v29 = vpop.permute.xlu1 %1160 }
 0x357   : > { %v1107_v56 = vpop.permute.xlu0 %1106  ;;  %1199 = vst.msk [vmem:[%s2803_s22 + $0x1a4] sm:$0xf] %vm805_vm1, %v1161_v29  ;;  %v2332_v29 = vunpack.i.l.bf16 %v3329_v13 }
 0x358   : > { %1140 = vst.msk [vmem:[%s2803_s22 + $0x178] sm:$0xf] %vm805_vm1, %v1107_v56  ;;  %1028 = vrot.lane.b32.xlu1 %v2875_v0, %s2459_s16 }
 0x35a   : > { %v1209_v59 = vpop.permute.xlu1 %1208 }
 0x35b   : > { %v1155_v62 = vpop.permute.xlu0 %1154  ;;  %1255 = vst.msk [vmem:[%s2803_s22 + $0x1c4] sm:$0xf] %vm805_vm1, %v1209_v59 }
 0x35c   : > { %1196 = vst.msk [vmem:[%s2803_s22 + $0x198] sm:$0xf] %vm805_vm1, %v1155_v62  ;;  %1044 = vrot.lane.b32.xlu1 %v2969_v60, %s2459_s16  ;;  %v2333_v62 = vunpack.i.h.bf16 %v3329_v13 }
 0x35e   : > { %v1225_v63 = vpop.permute.xlu1 %1224 }
 0x35f   : > { %v1171_v37 = vpop.permute.xlu0 %1170  ;;  %1263 = vst.msk [vmem:[%s2803_s22 + $0x1e4] sm:$0xf] %vm805_vm1, %v1225_v63 }
 0x360   : > { %1204 = vst.msk [vmem:[%s2803_s22 + $0x1b8] sm:$0xf] %vm805_vm1, %v1171_v37  ;;  %1092 = vrot.lane.b32.xlu1 %v2875_v0, %s2461_s18 }
 0x362   : > { %v1389_v2 = vpop.permute.xlu1 %1388 }
 0x363   : > { %v1219_v21 = vpop.permute.xlu0 %1218  ;;  %1435 = vst.msk [vmem:[%s3085_s14 + $0x4] sm:$0xf] %vm805_vm1, %v1389_v2  ;;  %v2322_v2 = vunpack.i.l.bf16 %v3169_v54 }
 0x364   : > { %1260 = vst.msk [vmem:[%s2803_s22 + $0x1d8] sm:$0xf] %vm805_vm1, %v1219_v21  ;;  %1108 = vrot.lane.b32.xlu1 %v2969_v60, %s2461_s18 }
 0x366   : > { %v1405_v3 = vpop.permute.xlu1 %1404 }
 0x367   : > { %v1235_v47 = vpop.permute.xlu0 %1234  ;;  %1443 = vst.msk [vmem:[%s3085_s14 + $0x24] sm:$0xf] %vm805_vm1, %v1405_v3  ;;  %v2323_v3 = vunpack.i.h.bf16 %v3169_v54 }
 0x368   : > { %1268 = vst.msk [vmem:[%s2803_s22 + $0x1f8] sm:$0xf] %vm805_vm1, %v1235_v47  ;;  %1156 = vrot.lane.b32.xlu1 %v2875_v0, %s2462_s19 }
 0x36a   : > { %v1453_v4 = vpop.permute.xlu1 %1452 }
 0x36b   : > { %v1463_v5 = vpop.permute.xlu0 %1462  ;;  %2131 = vst.msk [vmem:[%s3085_s14 + $0x44] sm:$0xf] %vm805_vm1, %v1453_v4 }
 0x36c   : > { %2136 = vst.msk [vmem:[%s3085_s14 + $0x58] sm:$0xf] %vm805_vm1, %v1463_v5  ;;  %1172 = vrot.lane.b32.xlu1 %v2969_v60, %s2462_s19 }
 0x36e   : > { %v1469_v25 = vpop.permute.xlu1 %1468 }
 0x36f   : > { %v831_v18 = vpop.permute.xlu0 %830  ;;  %2139 = vst.msk [vmem:[%s3085_s14 + $0x64] sm:$0xf] %vm805_vm1, %v1469_v25 }
 0x370   : > { %874 = vst.msk [vmem:[%s2803_s22 + $0x50] sm:$0xf] %vm805_vm1, %v831_v18  ;;  %1220 = vrot.lane.b32.xlu1 %v2875_v0, %s2463_s20 }
 0x372   : > { %v1399_v34 = vpop.permute.xlu1 %1398 }
 0x373   : > { %v847_v52 = vpop.permute.xlu0 %846  ;;  %1334 = vxpose.xlu0.b32.start [1/16] (narrow) %v2327_v6, 32  ;;  %1440 = vst.msk [vmem:[%s3085_s14 + $0x18] sm:$0xf] %vm805_vm1, %v1399_v34 }
 0x374   : > { %882 = vst.msk [vmem:[%s2803_s22 + $0x70] sm:$0xf] %vm805_vm1, %v847_v52  ;;  %1236 = vrot.lane.b32.xlu1 %v2969_v60, %s2463_s20 }
 0x376   : > { %v1415_v7 = vpop.permute.xlu1 %1414 }
 0x377   : > { %v895_v8 = vpop.permute.xlu0 %894  ;;  %1335 = vxpose.xlu0.b32.cont [2/16] (narrow) %v2328_v49, 32  ;;  %1448 = vst.msk [vmem:[%s3085_s14 + $0x38] sm:$0xf] %vm805_vm1, %v1415_v7 }
 0x378   : > { %938 = vst.msk [vmem:[%s2803_s22 + $0x90] sm:$0xf] %vm805_vm1, %v895_v8  ;;  %1400 = vrot.lane.b32.xlu1 %v2875_v0, %s2453_s29 }
 0x37a   : > { %v1479_v14 = vpop.permute.xlu1 %1478 }
 0x37b   : > { %v911_v9 = vpop.permute.xlu0 %910  ;;  %1336 = vxpose.xlu0.b32.cont [3/16] (narrow) %v2317_v12, 32  ;;  %2144 = vst.msk [vmem:[%s3085_s14 + $0x78] sm:$0xf] %vm805_vm1, %v1479_v14 }
 0x37c   : > { %946 = vst.msk [vmem:[%s2803_s22 + $0xb0] sm:$0xf] %vm805_vm1, %v911_v9  ;;  %1416 = vrot.lane.b32.xlu1 %v2969_v60, %s2453_s29 }
 0x37e   : > { %v1528_v19 = vpop.permute.xlu1 %1527 }
 0x37f   : > { %v959_v16 = vpop.permute.xlu0 %958  ;;  %1337 = vxpose.xlu0.b32.cont [4/16] (narrow) %v2318_v15, 32  ;;  %2152 = vst.msk [vmem:[%s3085_s14 + $0x98] sm:$0xf] %vm805_vm1, %v1528_v19 }
 0x380   : > { %1002 = vst.msk [vmem:[%s2803_s22 + $0xd0] sm:$0xf] %vm805_vm1, %v959_v16  ;;  %1464 = vrot.lane.b32.xlu1 %v2875_v0, %s3881_s13 }
 0x382   : > { %v1544_v26 = vpop.permute.xlu1 %1543 }
 0x383   : > { %v975_v30 = vpop.permute.xlu0 %974  ;;  %2160 = vst.msk [vmem:[%s3085_s14 + $0xb8] sm:$0xf] %vm805_vm1, %v1544_v26 }
 0x384   : > { %1010 = vst.msk [vmem:[%s2803_s22 + $0xf0] sm:$0xf] %vm805_vm1, %v975_v30  ;;  %1480 = vrot.lane.b32.xlu1 %v2969_v60, %s3881_s13 }
 0x386   : > { %v1593_v45 = vpop.permute.xlu1 %1592 }
 0x387   : > { %v1023_v22 = vpop.permute.xlu0 %1022  ;;  %2168 = vst.msk [vmem:[%s3085_s14 + $0xd8] sm:$0xf] %vm805_vm1, %v1593_v45 }
 0x388   : > { %1066 = vst.msk [vmem:[%s2803_s22 + $0x110] sm:$0xf] %vm805_vm1, %v1023_v22  ;;  %832 = vrot.lane.b32.xlu1 %v2888_v40, %s3880_s8 }
 0x38a   : > { %v2336_v0 = vpop.permute.xlu1 %2335 }
 0x38b   : > { %v1039_v55 = vpop.permute.xlu0 %1038  ;;  %v2337_v10 = vunpack.i.l.bf16 %v2336_v0  ;;  %v2338_v36 = vunpack.i.h.bf16 %v2336_v0 }
 0x38c   : > { %1074 = vst.msk [vmem:[%s2803_s22 + $0x130] sm:$0xf] %vm805_vm1, %v1039_v55  ;;  %848 = vrot.lane.b32.xlu1 %v2979_v35, %s3880_s8 }
 0x38e   : > { %v3567_v33 = vpop.permute.xlu1 %2340 }
 0x38f   : > { %v1087_v11 = vpop.permute.xlu0 %1086  ;;  %v2342_v6 = vunpack.i.l.bf16 %v3567_v33  ;;  %v2343_v34 = vunpack.i.h.bf16 %v3567_v33 }
 0x390   : > { %1130 = vst.msk [vmem:[%s2803_s22 + $0x150] sm:$0xf] %vm805_vm1, %v1087_v11  ;;  %896 = vrot.lane.b32.xlu1 %v2888_v40, %s3877_s9 }
 0x392   : > { %v1395_v58 = vpop.permute.xlu1 %1394 }
 0x393   : > { %v1103_v17 = vpop.permute.xlu0 %1102  ;;  %1438 = vst.msk [vmem:[%s3085_s14 + $0x10] sm:$0xf] %vm805_vm1, %v1395_v58 }
 0x394   : > { %1138 = vst.msk [vmem:[%s2803_s22 + $0x170] sm:$0xf] %vm805_vm1, %v1103_v17  ;;  %912 = vrot.lane.b32.xlu1 %v2979_v35, %s3877_s9 }
 0x396   : > { %v1411_v32 = vpop.permute.xlu1 %1410 }
 0x397   : > { %v1151_v38 = vpop.permute.xlu0 %1150  ;;  %1446 = vst.msk [vmem:[%s3085_s14 + $0x30] sm:$0xf] %vm805_vm1, %v1411_v32 }
 0x398   : > { %1194 = vst.msk [vmem:[%s2803_s22 + $0x190] sm:$0xf] %vm805_vm1, %v1151_v38  ;;  %960 = vrot.lane.b32.xlu1 %v2888_v40, %s3878_s17 }
 0x39a   : > { %v1459_v39 = vpop.permute.xlu1 %1458 }
 0x39b   : > { %v1167_v42 = vpop.permute.xlu0 %1166  ;;  %2134 = vst.msk [vmem:[%s3085_s14 + $0x50] sm:$0xf] %vm805_vm1, %v1459_v39 }
 0x39c   : > { %1202 = vst.msk [vmem:[%s2803_s22 + $0x1b0] sm:$0xf] %vm805_vm1, %v1167_v42  ;;  %976 = vrot.lane.b32.xlu1 %v2979_v35, %s3878_s17 }
 0x39e   : > { %v1475_v1 = vpop.permute.xlu1 %1474 }
 0x39f   : > { %v1215_v43 = vpop.permute.xlu0 %1214  ;;  %2142 = vst.msk [vmem:[%s3085_s14 + $0x70] sm:$0xf] %vm805_vm1, %v1475_v1 }
 0x3a0   : > { %1258 = vst.msk [vmem:[%s2803_s22 + $0x1d0] sm:$0xf] %vm805_vm1, %v1215_v43  ;;  %1024 = vrot.lane.b32.xlu1 %v2888_v40, %s2459_s16 }
 0x3a2   : > { %v1524_v46 = vpop.permute.xlu1 %1523 }
 0x3a3   : > { %v1231_v24 = vpop.permute.xlu0 %1230  ;;  %2150 = vst.msk [vmem:[%s3085_s14 + $0x90] sm:$0xf] %vm805_vm1, %v1524_v46 }
 0x3a4   : > { %1266 = vst.msk [vmem:[%s2803_s22 + $0x1f0] sm:$0xf] %vm805_vm1, %v1231_v24  ;;  %1040 = vrot.lane.b32.xlu1 %v2979_v35, %s2459_s16  ;;  %s3872_s16 = sshll.u32 %s2528_s28, 6 }
 0x3a6   : > { %v1540_v27 = vpop.permute.xlu1 %1539 }
 0x3a7   : > { %v2346_v20 = vpop.permute.xlu0 %2345  ;;  %2158 = vst.msk [vmem:[%s3085_s14 + $0xb0] sm:$0xf] %vm805_vm1, %v1540_v27 }
 0x3a8   : > { %v2347_v31 = vunpack.i.l.bf16 %v2346_v20  ;;  %1088 = vrot.lane.b32.xlu1 %v2888_v40, %s2461_s18  ;;  %v2348_v57 = vunpack.i.h.bf16 %v2346_v20 }
 0x3aa   : > { %1338 = vxpose.xlu0.b32.cont [5/16] (narrow) %v2347_v31, 32  ;;  %v1589_v41 = vpop.permute.xlu1 %1588 }
 0x3ab   : > { %v2351_v53 = vpop.permute.xlu0 %2350  ;;  %2166 = vst.msk [vmem:[%s3085_s14 + $0xd0] sm:$0xf] %vm805_vm1, %v1589_v41 }
 0x3ac   : > { %1104 = vrot.lane.b32.xlu1 %v2979_v35, %s2461_s18  ;;  %v2352_v5 = vunpack.i.l.bf16 %v2351_v53  ;;  %v2353_v25 = vunpack.i.h.bf16 %v2351_v53 }
 0x3ae   : > { %1339 = vxpose.xlu0.b32.cont [6/16] (narrow) %v2348_v57, 32  ;;  %v1605_v61 = vpop.permute.xlu1 %1604 }
 0x3af   : > { %v1530_v44 = vpop.permute.xlu0 %1529  ;;  %2174 = vst.msk [vmem:[%s3085_s14 + $0xf0] sm:$0xf] %vm805_vm1, %v1605_v61 }
 0x3b0   : > { %2153 = vst.msk [vmem:[%s3085_s14 + $0x9c] sm:$0xf] %vm805_vm1, %v1530_v44  ;;  %1152 = vrot.lane.b32.xlu1 %v2888_v40, %s2462_s19 }
 0x3b2   : > { %1340 = vxpose.xlu0.b32.cont [7/16] (narrow) %v2337_v10, 32  ;;  %v837_v48 = vpop.permute.xlu1 %836 }
 0x3b3   : > { %v1546_v50 = vpop.permute.xlu0 %1545  ;;  %877 = vst.msk [vmem:[%s2803_s22 + $0x5c] sm:$0xf] %vm805_vm1, %v837_v48 }
 0x3b4   : > { %2161 = vst.msk [vmem:[%s3085_s14 + $0xbc] sm:$0xf] %vm805_vm1, %v1546_v50  ;;  %1168 = vrot.lane.b32.xlu1 %v2979_v35, %s2462_s19  ;;  %s3718_s19 = scalar_lea.hbm %s3860_s6, %s3872_s16 }
 0x3b6   : > { %1341 = vxpose.xlu0.b32.cont [8/16] (narrow) %v2338_v36, 32  ;;  %v853_v51 = vpop.permute.xlu1 %852 }
 0x3b7   : > { %v1595_v28 = vpop.permute.xlu0 %1594  ;;  %885 = vst.msk [vmem:[%s2803_s22 + $0x7c] sm:$0xf] %vm805_vm1, %v853_v51 }
 0x3b8   : > { %2169 = vst.msk [vmem:[%s3085_s14 + $0xdc] sm:$0xf] %vm805_vm1, %v1595_v28  ;;  %1216 = vrot.lane.b32.xlu1 %v2888_v40, %s2463_s20 }
 0x3ba   : > { %1342 = vxpose.xlu0.b32.cont [9/16] (narrow) %v2332_v29, 32  ;;  %v901_v56 = vpop.permute.xlu1 %900 }
 0x3bb   : > { %v1526_v59 = vpop.permute.xlu0 %1525  ;;  %941 = vst.msk [vmem:[%s2803_s22 + $0x9c] sm:$0xf] %vm805_vm1, %v901_v56 }
 0x3bc   : > { %2151 = vst.msk [vmem:[%s3085_s14 + $0x94] sm:$0xf] %vm805_vm1, %v1526_v59  ;;  %1232 = vrot.lane.b32.xlu1 %v2979_v35, %s2463_s20 }
 0x3be   : > { %1343 = vxpose.xlu0.b32.cont [10/16] (narrow) %v2333_v62, 32  ;;  %v917_v63 = vpop.permute.xlu1 %916 }
 0x3bf   : > { %v1542_v37 = vpop.permute.xlu0 %1541  ;;  %949 = vst.msk [vmem:[%s2803_s22 + $0xbc] sm:$0xf] %vm805_vm1, %v917_v63 }
 0x3c0   : > { %2159 = vst.msk [vmem:[%s3085_s14 + $0xb4] sm:$0xf] %vm805_vm1, %v1542_v37  ;;  %1396 = vrot.lane.b32.xlu1 %v2888_v40, %s2453_s29 }
 0x3c2   : > { %1344 = vxpose.xlu0.b32.cont [11/16] (narrow) %v2322_v2, 32  ;;  %v965_v13 = vpop.permute.xlu1 %964 }
 0x3c3   : > { %v1591_v21 = vpop.permute.xlu0 %1590  ;;  %1005 = vst.msk [vmem:[%s2803_s22 + $0xdc] sm:$0xf] %vm805_vm1, %v965_v13 }
 0x3c4   : > { %2167 = vst.msk [vmem:[%s3085_s14 + $0xd4] sm:$0xf] %vm805_vm1, %v1591_v21  ;;  %1412 = vrot.lane.b32.xlu1 %v2979_v35, %s2453_s29  ;;  %s2089_s29 = sshll.u32 %s3072_s21, 4 }
 0x3c5   : > { %s280_s8 = scalar_lea.vmem [#allocation2], %s2089_s29 }
 0x3c6   : > { %1345 = vxpose.xlu0.b32.cont [12/16] (narrow) %v2323_v3, 32  ;;  %v981_v47 = vpop.permute.xlu1 %980 }
 0x3c7   : > { %v1607_v4 = vpop.permute.xlu0 %1606  ;;  %1013 = vst.msk [vmem:[%s2803_s22 + $0xfc] sm:$0xf] %vm805_vm1, %v981_v47 }
 0x3c8   : > { %2175 = vst.msk [vmem:[%s3085_s14 + $0xf4] sm:$0xf] %vm805_vm1, %v1607_v4  ;;  %1460 = vrot.lane.b32.xlu1 %v2888_v40, %s3881_s13 }
 0x3ca   : > { %1346 = vxpose.xlu0.b32.cont [13/16] (narrow) %v2352_v5, 32  ;;  %v1029_v54 = vpop.permute.xlu1 %1028 }
 0x3cb   : > { %1069 = vst.msk [vmem:[%s2803_s22 + $0x11c] sm:$0xf] %vm805_vm1, %v1029_v54 }
 0x3cc   : > { %1476 = vrot.lane.b32.xlu1 %v2979_v35, %s3881_s13  ;;  %s2464_s13 = smov [#allocation2]  }
 0x3cd   : > { %s2394_s29 = sshll.u32 %s2464_s13, 4  ;;  %s2395_s29 = int_to_ptr.vmem [resolvable:$false] %s2394_s29 }
 0x3ce   : > { %1347 = vxpose.xlu0.b32.cont [14/16] (narrow) %v2353_v25, 32  ;;  %v1045_v18 = vpop.permute.xlu1 %1044  ;;  %s2396_s0 = scalar_lea.vmem %s2395_s29, 512 }
 0x3cf   : > { %1077 = vst.msk [vmem:[%s2803_s22 + $0x13c] sm:$0xf] %vm805_vm1, %v1045_v18 }
 0x3d0   : > { %1608 = vrot.lane.b32.xlu1 %v2943_v23, %s2458_s15 }
 0x3d2   : > { %1348 = vxpose.xlu0.b32.cont [15/16] (narrow) %v2342_v6, 32  ;;  %v1093_v40 = vpop.permute.xlu1 %1092 }
 0x3d3   : > { %1133 = vst.msk [vmem:[%s2803_s22 + $0x15c] sm:$0xf] %vm805_vm1, %v1093_v40 }
 0x3d6   : > { %1349 = vxpose.xlu0.b32.end [16/16] (narrow) %v2343_v34, 32  ;;  %v1109_v35 = vpop.permute.xlu1 %1108 }
 0x3d7   : > { %1141 = vst.msk [vmem:[%s2803_s22 + $0x17c] sm:$0xf] %vm805_vm1, %v1109_v35 }
 0x3da   : > { %v1157_v52 = vpop.permute.xlu1 %1156 }
 0x3db   : > { %1197 = vst.msk [vmem:[%s2803_s22 + $0x19c] sm:$0xf] %vm805_vm1, %v1157_v52 }
 0x3de   : > { %v1173_v49 = vpop.permute.xlu1 %1172 }
 0x3df   : > { %1205 = vst.msk [vmem:[%s2803_s22 + $0x1bc] sm:$0xf] %vm805_vm1, %v1173_v49 }
 0x3e2   : > { %v1221_v23 = vpop.permute.xlu1 %1220 }
 0x3e3   : > { %1261 = vst.msk [vmem:[%s2803_s22 + $0x1dc] sm:$0xf] %vm805_vm1, %v1221_v23 }
 0x3e6   : > { %v1237_v7 = vpop.permute.xlu1 %1236 }
 0x3e7   : > { %1269 = vst.msk [vmem:[%s2803_s22 + $0x1fc] sm:$0xf] %vm805_vm1, %v1237_v7 }
 0x3ea   : > { %v1401_v8 = vpop.permute.xlu1 %1400 }
 0x3eb   : > { %1441 = vst.msk [vmem:[%s3085_s14 + $0x1c] sm:$0xf] %vm805_vm1, %v1401_v8 }
 0x3ee   : > { %v1417_v12 = vpop.permute.xlu1 %1416 }
 0x3ef   : > { %1449 = vst.msk [vmem:[%s3085_s14 + $0x3c] sm:$0xf] %vm805_vm1, %v1417_v12 }
 0x3f2   : > { %v1465_v14 = vpop.permute.xlu1 %1464 }
 0x3f3   : > { %2137 = vst.msk [vmem:[%s3085_s14 + $0x5c] sm:$0xf] %vm805_vm1, %v1465_v14 }
 0x3f6   : > { %v1481_v9 = vpop.permute.xlu1 %1480 }
 0x3f7   : > { %2145 = vst.msk [vmem:[%s3085_s14 + $0x7c] sm:$0xf] %vm805_vm1, %v1481_v9 }
 0x3fa   : > { %v833_v15 = vpop.permute.xlu1 %832 }
 0x3fb   : > { %875 = vst.msk [vmem:[%s2803_s22 + $0x54] sm:$0xf] %vm805_vm1, %v833_v15 }
 0x3fe   : > { %v849_v19 = vpop.permute.xlu1 %848 }
 0x3ff   : > { %1610 = vrot.lane.b32.xlu0 %v2969_v60, %s2458_s15  ;;  %883 = vst.msk [vmem:[%s2803_s22 + $0x74] sm:$0xf] %vm805_vm1, %v849_v19  ;;  %s1671_s15 = sshll.u32 %s280_s8, 4  ;;  %s3711_s15 = int_to_ptr.vmem [resolvable:$true] %s1671_s15 }
 0x400   : > { %s2390_s9 = scalar_lea.vmem %s3711_s15, 256  ;;  %p2397_p1 = scmp.lt.s32.totalorder %s3711_s15, %s2395_s29 }
 0x401   : > { %p2391_p12 = scmp.ne.s32.totalorder %s3711_s15, %s2390_s9  ;;  %p2398_p2 = scmp.lt.s32.totalorder %s2396_s0, %s2390_s9 }
 0x402   : > { %v897_v16 = vpop.permute.xlu1 %896 }
 0x403   : > { %939 = vst.msk [vmem:[%s2803_s22 + $0x94] sm:$0xf] %vm805_vm1, %v897_v16  ;;  %p2392_p13 = pnand %p2391_p12, %p2545_p5  ;;  %p2399_p3 = por %p2398_p2, %p2397_p1 }
 0x405   : > { %p2393_p0 = pneg %p2392_p13 }
 0x406   : > { %v913_v26 = vpop.permute.xlu1 %912 }
 0x407   : > { %947 = vst.msk [vmem:[%s2803_s22 + $0xb4] sm:$0xf] %vm805_vm1, %v913_v26  ;;  %p2400_p4 = pnand %p2399_p3, %p2393_p0 }
 0x40a   : > { %v961_v30 = vpop.permute.xlu1 %960 }
 0x40b   : > { %1003 = vst.msk [vmem:[%s2803_s22 + $0xd4] sm:$0xf] %vm805_vm1, %v961_v30 }
 0x40e   : > { %v977_v45 = vpop.permute.xlu1 %976 }
 0x40f   : > { %1011 = vst.msk [vmem:[%s2803_s22 + $0xf4] sm:$0xf] %vm805_vm1, %v977_v45 }
 0x412   : > { %v1025_v22 = vpop.permute.xlu1 %1024 }
 0x413   : > { %1067 = vst.msk [vmem:[%s2803_s22 + $0x114] sm:$0xf] %vm805_vm1, %v1025_v22 }
 0x416   : > { %v1350_v60 = vpop.trf.xlu0  ;;  %v1041_v0 = vpop.permute.xlu1 %1040 }
 0x417   : > { %1075 = vst.msk [vmem:[%s2803_s22 + $0x134] sm:$0xf] %vm805_vm1, %v1041_v0 }
 0x41a   : > { %v1351_v55 = vpop.trf.xlu0  ;;  %v1089_v33 = vpop.permute.xlu1 %1088 }
 0x41b   : > { %v2209_v11 = vpack.c.bf16 %v1351_v55, %v1350_v60  ;;  %1131 = vst.msk [vmem:[%s2803_s22 + $0x154] sm:$0xf] %vm805_vm1, %v1089_v33 }
 0x41d   : > { %2210 = vst [vmem:[%s280_s8] sm:$0xff] %v2209_v11  }
 0x41e   : > { %v1352_v58 = vpop.trf.xlu0  ;;  %v1105_v17 = vpop.permute.xlu1 %1104 }
 0x41f   : > { %1139 = vst.msk [vmem:[%s2803_s22 + $0x174] sm:$0xf] %vm805_vm1, %v1105_v17 }
 0x422   : > { %v1353_v32 = vpop.trf.xlu0  ;;  %v1153_v38 = vpop.permute.xlu1 %1152 }
 0x423   : > { %v2214_v39 = vpack.c.bf16 %v1353_v32, %v1352_v58  ;;  %1195 = vst.msk [vmem:[%s2803_s22 + $0x194] sm:$0xf] %vm805_vm1, %v1153_v38 }
 0x425   : > { %2216 = vst [vmem:[%s280_s8 + $0x8] sm:$0xff] %v2214_v39  }
 0x426   : > { %2403 = shalt.err (!%p2400_p4)
}
 0x427   : > { %s2404_s8 = scalar_lea.hbm %s3718_s19, 256  ;;  %s2408_s13 = scalar_lea.hbm %s3860_s6, 512 }
 0x428   : > { %p2405_p7 = scmp.ne.s32.totalorder %s3718_s19, %s2404_s8  ;;  %p2409_p10 = scmp.lt.s32.totalorder %s3718_s19, %s3860_s6 }
 0x429   : > { %p2410_p11 = scmp.lt.s32.totalorder %s2408_s13, %s2404_s8 }
 0x42a   : > { %p2406_p8 = pnand %p2405_p7, %p2545_p5 }
 0x42b   : > { %p2411_p12 = por %p2410_p11, %p2409_p10 }
 0x42c   : > { %p2407_p9 = pneg %p2406_p8 }
 0x42e   : > { %p2412_p13 = pnand %p2411_p12, %p2407_p9 }
 0x430   : > { %2415 = shalt.err (!%p2412_p13)
}
 0x431   : > { %s2465_s0 = smov 128   ;;  %s2466_s9 = smov 4   ;;  %v1169_v42 = vpop.permute.xlu1 %1168  ;;  %v1700_v53 = vld [vmem:[%s3085_s14] sm:$0xff] (%p2545_p5)   ;;  %v1704_v57 = vld [vmem:[%s3085_s14 + $0x8] sm:$0xff] (%p2545_p5)   ;;  %v1712_v44 = vld [vmem:[%s3085_s14 + $0x18] sm:$0xff] (%p2545_p5)  }
 0x432   : > { %s3882_s16 = scalar_lea.sflag [#allocation3], %s3072_s21  ;;  %1203 = vst.msk [vmem:[%s2803_s22 + $0x1b4] sm:$0xf] %vm805_vm1, %v1169_v42  ;;  %v1716_v10 = vld [vmem:[%s3085_s14 + $0x20] sm:$0xff] (%p2545_p5)   ;;  %v1720_v48 = vld [vmem:[%s3085_s14 + $0x28] sm:$0xff] (%p2545_p5)   ;;  %v1728_v36 = vld [vmem:[%s3085_s14 + $0x38] sm:$0xff] (%p2545_p5)  }
 0x433   : > { %2261 = dma.vmem_to_hbm [thread:$0]  (%p2545_p5), %s3711_s15, 256, %s3718_s19, %s3882_s16, %s3879_s23, %s2465_s0, %s2466_s9  }
 0x434   : > { %v1732_v51 = vld [vmem:[%s3085_s14 + $0x40] sm:$0xff] (%p2545_p5)   ;;  %v1736_v28 = vld [vmem:[%s3085_s14 + $0x48] sm:$0xff] (%p2545_p5)   ;;  %v1744_v56 = vld [vmem:[%s3085_s14 + $0x58] sm:$0xff] (%p2545_p5)  }
 0x435   : > { %v1217_v1 = vpop.permute.xlu1 %1216  ;;  %v1748_v59 = vld [vmem:[%s3085_s14 + $0x60] sm:$0xff] (%p2545_p5)   ;;  %v1752_v62 = vld [vmem:[%s3085_s14 + $0x68] sm:$0xff] (%p2545_p5)   ;;  %v1760_v37 = vld [vmem:[%s3085_s14 + $0x78] sm:$0xff] (%p2545_p5)  }
 0x436   : > { %1259 = vst.msk [vmem:[%s2803_s22 + $0x1d4] sm:$0xf] %vm805_vm1, %v1217_v1  ;;  %v1764_v2 = vld [vmem:[%s3085_s14 + $0x80] sm:$0xff] (%p2545_p5)   ;;  %v1768_v13 = vld [vmem:[%s3085_s14 + $0x88] sm:$0xff] (%p2545_p5)   ;;  %v1772_v21 = vld [vmem:[%s3085_s14 + $0x90] sm:$0xff] (%p2545_p5)  }
 0x437   : > { %v1776_v3 = vld [vmem:[%s3085_s14 + $0x98] sm:$0xff] (%p2545_p5)   ;;  %v1780_v47 = vld [vmem:[%s3085_s14 + $0xa0] sm:$0xff] (%p2545_p5)   ;;  %v1784_v4 = vld [vmem:[%s3085_s14 + $0xa8] sm:$0xff] (%p2545_p5)  }
 0x438   : > { %v1788_v5 = vld [vmem:[%s3085_s14 + $0xb0] sm:$0xff] (%p2545_p5)   ;;  %v1792_v54 = vld [vmem:[%s3085_s14 + $0xb8] sm:$0xff] (%p2545_p5)   ;;  %v1796_v25 = vld [vmem:[%s3085_s14 + $0xc0] sm:$0xff] (%p2545_p5)  }
 0x439   : > { %v1233_v43 = vpop.permute.xlu1 %1232  ;;  %v1800_v18 = vld [vmem:[%s3085_s14 + $0xc8] sm:$0xff] (%p2545_p5)   ;;  %v1804_v6 = vld [vmem:[%s3085_s14 + $0xd0] sm:$0xff] (%p2545_p5)   ;;  %v1808_v40 = vld [vmem:[%s3085_s14 + $0xd8] sm:$0xff] (%p2545_p5)  }
 0x43a   : > { %1267 = vst.msk [vmem:[%s2803_s22 + $0x1f4] sm:$0xf] %vm805_vm1, %v1233_v43  ;;  %s3883_s22 = sshll.u32 (%p2545_p5), %s2528_s28, 6  ;;  %v1812_v34 = vld [vmem:[%s3085_s14 + $0xe0] sm:$0xff] (%p2545_p5)   ;;  %v1816_v35 = vld [vmem:[%s3085_s14 + $0xe8] sm:$0xff] (%p2545_p5)   ;;  %v1820_v52 = vld [vmem:[%s3085_s14 + $0xf0] sm:$0xff] (%p2545_p5)  }
 0x43b   : > { %s3771_s15 = scalar_lea.vmem (%p2545_p5), %s3861_s7, %s3883_s22 }
 0x43c   : > { %1701 = vst [vmem:[%s3771_s15] sm:$0xff] (%p2545_p5), %v1700_v53   ;;  %1705 = vst [vmem:[%s3771_s15 + $0x8] sm:$0xff] (%p2545_p5), %v1704_v57  }
 0x43d   : > { %v1397_v46 = vpop.permute.xlu1 %1396  ;;  %1713 = vst [vmem:[%s3771_s15 + $0x18] sm:$0xff] (%p2545_p5), %v1712_v44   ;;  %1717 = vst [vmem:[%s3771_s15 + $0x20] sm:$0xff] (%p2545_p5), %v1716_v10  }
 0x43e   : > { %1439 = vst.msk [vmem:[%s3085_s14 + $0x14] sm:$0xf] %vm805_vm1, %v1397_v46  ;;  %1721 = vst [vmem:[%s3771_s15 + $0x28] sm:$0xff] (%p2545_p5), %v1720_v48  }
 0x43f   : > { %1729 = vst [vmem:[%s3771_s15 + $0x38] sm:$0xff] (%p2545_p5), %v1728_v36   ;;  %1733 = vst [vmem:[%s3771_s15 + $0x80] sm:$0xff] (%p2545_p5), %v1732_v51  }
 0x440   : > { %1737 = vst [vmem:[%s3771_s15 + $0x88] sm:$0xff] (%p2545_p5), %v1736_v28   ;;  %1745 = vst [vmem:[%s3771_s15 + $0x98] sm:$0xff] (%p2545_p5), %v1744_v56  }
 0x441   : > { %v1413_v24 = vpop.permute.xlu1 %1412  ;;  %1749 = vst [vmem:[%s3771_s15 + $0xa0] sm:$0xff] (%p2545_p5), %v1748_v59   ;;  %1753 = vst [vmem:[%s3771_s15 + $0xa8] sm:$0xff] (%p2545_p5), %v1752_v62  }
 0x442   : > { %1447 = vst.msk [vmem:[%s3085_s14 + $0x34] sm:$0xf] %vm805_vm1, %v1413_v24  ;;  %1761 = vst [vmem:[%s3771_s15 + $0xb8] sm:$0xff] (%p2545_p5), %v1760_v37  }
 0x443   : > { %1765 = vst [vmem:[%s3771_s15 + $0x100] sm:$0xff] (%p2545_p5), %v1764_v2   ;;  %1769 = vst [vmem:[%s3771_s15 + $0x108] sm:$0xff] (%p2545_p5), %v1768_v13  }
 0x444   : > { %1773 = vst [vmem:[%s3771_s15 + $0x110] sm:$0xff] (%p2545_p5), %v1772_v21   ;;  %1777 = vst [vmem:[%s3771_s15 + $0x118] sm:$0xff] (%p2545_p5), %v1776_v3  }
 0x445   : > { %v1461_v27 = vpop.permute.xlu1 %1460  ;;  %v1708_v61 = vld [vmem:[%s3085_s14 + $0x10] sm:$0xff] (%p2545_p5)   ;;  %1781 = vst [vmem:[%s3771_s15 + $0x120] sm:$0xff] (%p2545_p5), %v1780_v47   ;;  %1785 = vst [vmem:[%s3771_s15 + $0x128] sm:$0xff] (%p2545_p5), %v1784_v4  }
 0x446   : > { %2135 = vst.msk [vmem:[%s3085_s14 + $0x54] sm:$0xf] %vm805_vm1, %v1461_v27  ;;  %1709 = vst [vmem:[%s3771_s15 + $0x10] sm:$0xff] (%p2545_p5), %v1708_v61  }
 0x447   : > { %1789 = vst [vmem:[%s3771_s15 + $0x130] sm:$0xff] (%p2545_p5), %v1788_v5   ;;  %1793 = vst [vmem:[%s3771_s15 + $0x138] sm:$0xff] (%p2545_p5), %v1792_v54  }
 0x448   : > { %1797 = vst [vmem:[%s3771_s15 + $0x180] sm:$0xff] (%p2545_p5), %v1796_v25   ;;  %1801 = vst [vmem:[%s3771_s15 + $0x188] sm:$0xff] (%p2545_p5), %v1800_v18  }
 0x449   : > { %v1477_v20 = vpop.permute.xlu1 %1476  ;;  %v1724_v50 = vld [vmem:[%s3085_s14 + $0x30] sm:$0xff] (%p2545_p5)   ;;  %1805 = vst [vmem:[%s3771_s15 + $0x190] sm:$0xff] (%p2545_p5), %v1804_v6   ;;  %1809 = vst [vmem:[%s3771_s15 + $0x198] sm:$0xff] (%p2545_p5), %v1808_v40  }
 0x44a   : > { %2143 = vst.msk [vmem:[%s3085_s14 + $0x74] sm:$0xf] %vm805_vm1, %v1477_v20  ;;  %1725 = vst [vmem:[%s3771_s15 + $0x30] sm:$0xff] (%p2545_p5), %v1724_v50  }
 0x44b   : > { %1813 = vst [vmem:[%s3771_s15 + $0x1a0] sm:$0xff] (%p2545_p5), %v1812_v34   ;;  %1817 = vst [vmem:[%s3771_s15 + $0x1a8] sm:$0xff] (%p2545_p5), %v1816_v35  }
 0x44c   : > { %1821 = vst [vmem:[%s3771_s15 + $0x1b0] sm:$0xff] (%p2545_p5), %v1820_v52  }
 0x44d   : > { %v1609_v31 = vpop.permute.xlu1 %1608  ;;  %v1740_v29 = vld [vmem:[%s3085_s14 + $0x50] sm:$0xff] (%p2545_p5)  }
 0x44e   : > { %2176 = vst.msk [vmem:[%s3085_s14 + $0xf8] sm:$0xf] %vm805_vm1, %v1609_v31  ;;  %1741 = vst [vmem:[%s3771_s15 + $0x90] sm:$0xff] (%p2545_p5), %v1740_v29  }
 0x451   : > { %v1756_v63 = vld [vmem:[%s3085_s14 + $0x70] sm:$0xff] (%p2545_p5)  }
 0x452   : > { %1757 = vst [vmem:[%s3771_s15 + $0xb0] sm:$0xff] (%p2545_p5), %v1756_v63  }
 0x46e   : > { %1680 = sbr.rel (!%p2545_p5) target bundleno = 1147 (0x47b), region = 52 }
 0x471   : > { %v1611_v41 = vpop.permute.xlu0 %1610 }
 0x472   : > { %2177 = vst.msk [vmem:[%s3085_s14 + $0xfc] sm:$0xf] %vm805_vm1, %v1611_v41 }
 0x479   : > { %v1824_v49 = vld [vmem:[%s3085_s14 + $0xf8] sm:$0xff]  }
 0x47a   : > { %1825 = vst [vmem:[%s3771_s15 + $0x1b8] sm:$0xff] %v1824_v49  }
 0x47b PF: > { %p2267_p5 = scmp.ge.s32.totalorder %s2450_s27, 2  ;;  %s1993_s28 = sand.u32 1, %s2438_s24  }
 0x47c   : > { %s1994_s11 = scalar_lea.sflag [#allocation3], %s1993_s28 }
 0x47d   : > { %p2264_p0 = pnand %p2267_p5, %p2549_p6 }
 0x47f   : > { %p2265_p1 = pneg %p2264_p0 }
 0x481   : > { %2433 = dma.done.wait (%p2265_p1), %s1994_s11, 256  }
 0x482   : > { %2435 = vsyncadd (%p2265_p1), %s1994_s11, 4294967040  ;;  %p18_p2 = scmp.ge.s32.totalorder %s2532_s30, 4   ;;  %s3884_s24 = smov %s2442_s25 }
 0x483   : > { %s3885_s25 = smov %s2446_s26  ;;  %s3886_s26 = smov %s2543_s10 }
 0x484   : > { %s3887_s27 = smov %s2532_s30  ;;  %20 = sbr.rel (!%p18_p2) target bundleno = 5 (0x5), region = 143 }
 0x489   :  { %2006 = vsyncpa [#allocation3], 1 }
 0x48a   :  { %2008 = vsyncpa [#allocation3 + $0x1], 1 }

</bundles_post_ra>
